<compile_context>
chip_gen: v7x
topology: tpu7x:2x2x1
jax: 0.10.0
libtpu: 0.0.40
codegen_flags: <defaults>
</compile_context>

<pallas_src>
import functools

import jax
import jax.numpy as jnp
from jax.experimental import pallas as pl
from jax.experimental.pallas import tpu as pltpu


# ----------------------------------------------------------------------------
# Kernel 1: conv via single im2col matmul (+ per-image BN partial stats)
# ----------------------------------------------------------------------------
def conv_im2col_kernel(x_ref, w_ref, y_ref, stats_ref, xp_ref, col_ref, *,
                       KH, KW, OH, OW, Cin, Cout, stride, padding):
    # x_ref    : (1, H, W, Cin)        f32   unpadded input image (NHWC)
    # w_ref    : (KH*KW*Cin, Cout)     bf16  flattened conv weights (HWIO order)
    # y_ref    : (1, OH*OW, Cout)      f32   conv output
    # stats_ref: (1, 2, Cout)          f32   [sum, sum of squares] per channel
    # xp_ref   : VMEM (PH, PW, Cin)    f32   zero-padded image scratch
    # col_ref  : VMEM (OH*OW, KH*KW*Cin) f32 im2col slab scratch
    H, W = x_ref.shape[1], x_ref.shape[2]

    # In-kernel zero padding (no extra HBM pass for jnp.pad).
    if padding > 0:
        xp_ref[...] = jnp.zeros_like(xp_ref)
    xp_ref[padding:padding + H, padding:padding + W, :] = x_ref[0]

    xp = xp_ref[...]                                       # (PH, PW, Cin)

    # Build the im2col slab with static (unrolled) tap offsets: 9 masked
    # stores into VMEM, then ONE matmul with K = KH*KW*Cin.
    for kh in range(KH):
        for kw in range(KW):
            patch = jax.lax.slice(
                xp,
                (kh, kw, 0),
                (kh + stride * (OH - 1) + 1, kw + stride * (OW - 1) + 1, Cin),
                (stride, stride, 1),
            )                                              # (OH, OW, Cin)
            t = (kh * KW + kw) * Cin
            col_ref[:, t:t + Cin] = patch.reshape(OH * OW, Cin)

    col = col_ref[...]                                     # (OH*OW, KH*KW*Cin)
    y = jnp.dot(col.astype(jnp.bfloat16), w_ref[...],      # bf16 MXU path,
                preferred_element_type=jnp.float32)        # f32 accumulation
    y_ref[0] = y

    # Per-image partial batch-norm statistics (f32) — avoids re-reading y for
    # a separate stats pass.
    stats_ref[0, 0:1, :] = jnp.sum(y, axis=0, keepdims=True)
    stats_ref[0, 1:2, :] = jnp.sum(y * y, axis=0, keepdims=True)


# ----------------------------------------------------------------------------
# Kernel 2: tiled, lane-dense BatchNorm apply + ReLU
# ----------------------------------------------------------------------------
def bn_relu_apply_kernel(y_ref, scale_ref, shift_ref, o_ref):
    # y_ref: (TR, L) f32   scale/shift: (1, L) f32 (per-lane, pre-tiled)
    o_ref[...] = jnp.maximum(
        y_ref[...] * scale_ref[...] + shift_ref[...], 0.0).astype(o_ref.dtype)


def _pick_row_tile(rows, max_tile=2048):
    """Largest multiple-of-8 divisor of `rows` <= max_tile, preferring grid>=4."""
    divisors = [d for d in range(8, min(rows, max_tile) + 1, 8) if rows % d == 0]
    if not divisors:
        return rows
    preferred = [d for d in divisors if rows // d >= 4]
    return max(preferred) if preferred else max(divisors)


# ----------------------------------------------------------------------------
# Wrapper: NCHW in, NCHW out (matches torch semantics)
# ----------------------------------------------------------------------------
def conv_basic_forward(x_nchw, w_hwio, gamma, beta, *, stride=1, padding=1,
                       eps=1e-5):
    x = jnp.transpose(x_nchw, (0, 2, 3, 1)).astype(jnp.float32)   # NHWC
    N, H, W, Cin = x.shape
    KH, KW, _, Cout = w_hwio.shape
    OH = (H + 2 * padding - KH) // stride + 1
    OW = (W + 2 * padding - KW) // stride + 1
    PH, PW = H + 2 * padding, W + 2 * padding
    M = OH * OW
    KK = KH * KW * Cin

    w2 = w_hwio.reshape(KK, Cout).astype(jnp.bfloat16)   # (kh, kw, ci) row-major

    flops = 2 * N * M * KK * Cout
    bytes_accessed = int(x.size * 4 + w2.size * 2 + N * M * Cout * 4
                         + N * 2 * Cout * 4)

    conv_y, stats = pl.pallas_call(
        functools.partial(conv_im2col_kernel, KH=KH, KW=KW, OH=OH, OW=OW,
                          Cin=Cin, Cout=Cout, stride=stride, padding=padding),
        grid=(N,),
        in_specs=[
            pl.BlockSpec((1, H, W, Cin), lambda n: (n, 0, 0, 0)),
            pl.BlockSpec((KK, Cout), lambda n: (0, 0)),       # weights resident
        ],
        out_specs=(
            pl.BlockSpec((1, M, Cout), lambda n: (n, 0, 0)),
            pl.BlockSpec((1, 2, Cout), lambda n: (n, 0, 0)),
        ),
        out_shape=(
            jax.ShapeDtypeStruct((N, M, Cout), jnp.float32),
            jax.ShapeDtypeStruct((N, 2, Cout), jnp.float32),
        ),
        scratch_shapes=[
            pltpu.VMEM((PH, PW, Cin), jnp.float32),    # padded image
            pltpu.VMEM((M, KK), jnp.float32),          # im2col slab
        ],
        compiler_params=pltpu.CompilerParams(
            dimension_semantics=("parallel",),
            vmem_limit_bytes=32 * 1024 * 1024),        # safe on v7x (64 MiB)
        cost_estimate=pl.CostEstimate(flops=flops, transcendentals=0,
                                      bytes_accessed=bytes_accessed),
    )(x, w2)

    # Finalize batch statistics: tiny per-channel math (Cout scalars) in XLA.
    tot = jnp.sum(stats, axis=0)                        # (2, Cout)
    cnt = float(N * M)
    mean = tot[0] / cnt
    var = tot[1] / cnt - mean * mean                    # biased var (training BN)
    inv = jax.lax.rsqrt(var + eps)
    scale = gamma.astype(jnp.float32) * inv
    shift = beta.astype(jnp.float32) - mean * scale

    # Lane-dense tiled BN+ReLU apply: view y as (rows, 128) so every load and
    # store uses full 128-lane vregs; gamma/beta folded into per-lane
    # scale/shift rows (broadcast hoisted out of the kernel loop).
    LANES = 128
    total = N * M * Cout
    if Cout <= LANES and LANES % Cout == 0 and total % LANES == 0:
        y2d = conv_y.reshape(total // LANES, LANES)
        rep = LANES // Cout
        scale_row = jnp.tile(scale, rep).reshape(1, LANES)
        shift_row = jnp.tile(shift, rep).reshape(1, LANES)
    else:  # fallback: channel-minor layout (still tiled over rows)
        y2d = conv_y.reshape(N * M, Cout)
        scale_row = scale.reshape(1, Cout)
        shift_row = shift.reshape(1, Cout)
    rows, width = y2d.shape
    tr = _pick_row_tile(rows)

    out2d = pl.pallas_call(
        bn_relu_apply_kernel,
        grid=(rows // tr,),
        in_specs=[
            pl.BlockSpec((tr, width), lambda i: (i, 0)),
            pl.BlockSpec((1, width), lambda i: (0, 0)),
            pl.BlockSpec((1, width), lambda i: (0, 0)),
        ],
        out_specs=pl.BlockSpec((tr, width), lambda i: (i, 0)),
        out_shape=jax.ShapeDtypeStruct((rows, width), jnp.float32),
        compiler_params=pltpu.CompilerParams(
            dimension_semantics=("parallel",)),
    )(y2d, scale_row, shift_row)

    out_nhwc = out2d.reshape(N, OH, OW, Cout)
    return jnp.transpose(out_nhwc, (0, 3, 1, 2))                   # back to NCHW


if __name__ == "__main__":
    # ConvBasic(nIn=4, nOut=8, kernel=3, stride=1, padding=1)
    N, Cin, H, W = 2, 4, 16, 16
    Cout, K, stride, padding = 8, 3, 1, 1
    eps = 1e-5

    key = jax.random.PRNGKey(0)
    kx, kw, kg, kb = jax.random.split(key, 4)
    x = jax.random.normal(kx, (N, Cin, H, W), jnp.float32)
    # Deterministic synthetic parameters (PyTorch default gamma=1, beta=0;
    # random values exercise the full math).
    w_hwio = jax.random.normal(kw, (K, K, Cin, Cout), jnp.float32) * 0.1
    gamma = jax.random.normal(kg, (Cout,), jnp.float32) * 0.5 + 1.0
    beta = jax.random.normal(kb, (Cout,), jnp.float32) * 0.1

    out = conv_basic_forward(x, w_hwio, gamma, beta,
                             stride=stride, padding=padding, eps=eps)
    out = jax.block_until_ready(out)

    # Reference (plain JAX) using the same bf16-rounded matmul inputs so the
    # check stays tight despite the bf16 MXU path (f32 accumulation).
    xb = x.astype(jnp.bfloat16).astype(jnp.float32)
    wb = w_hwio.astype(jnp.bfloat16).astype(jnp.float32)
    x_nhwc = jnp.transpose(xb, (0, 2, 3, 1))
    ref_conv = jax.lax.conv_general_dilated(
        x_nhwc, wb, (stride, stride),
        ((padding, padding), (padding, padding)),
        dimension_numbers=("NHWC", "HWIO", "NHWC"))
    m = ref_conv.mean((0, 1, 2))
    v = ref_conv.var((0, 1, 2))
    ref = jnp.maximum((ref_conv - m) * jax.lax.rsqrt(v + eps) * gamma + beta,
                      0.0)
    ref = jnp.transpose(ref, (0, 3, 1, 2))

    assert out.shape == (N, Cout, H, W)
    assert jnp.allclose(out, ref, atol=2e-3, rtol=2e-3), \
        float(jnp.max(jnp.abs(out - ref)))
    print("KERNEL_OK")
</pallas_src>

<mosaic_0001>
module attributes {stable_mosaic.version = 11 : i64} {
  func.func @conv_im2col_kernel(%arg0: i32, %arg1: memref<1x16x16x4xf32, #tpu.memory_space<vmem>>, %arg2: memref<36x8xbf16, #tpu.memory_space<vmem>>, %arg3: memref<1x256x8xf32, #tpu.memory_space<vmem>>, %arg4: memref<1x2x8xf32, #tpu.memory_space<vmem>>, %arg5: memref<18x18x4xf32, #tpu.memory_space<vmem>>, %arg6: memref<256x36xf32, #tpu.memory_space<vmem>>) attributes {dimension_semantics = [#tpu.dimension_semantics<parallel>], iteration_bounds = array<i64: 2>, scalar_prefetch = 0 : i64, scratch_operands = 2 : i64, tpu.core_type = #tpu.core_type<tc>, window_params = [{transform_indices = @transform_0, window_bounds = array<i64: 1, 16, 16, 4>}, {pipeline_mode = #tpu.pipeline_mode<synchronous>, transform_indices = @transform_1, window_bounds = array<i64: 36, 8>}, {transform_indices = @transform_2, window_bounds = array<i64: 1, 256, 8>}, {transform_indices = @transform_3, window_bounds = array<i64: 1, 2, 8>}]} {
    %cst = arith.constant 0.000000e+00 : f32
    %0 = vector.broadcast %cst : f32 to vector<18x18x4xf32>
    %c0 = arith.constant 0 : index
    %c0_0 = arith.constant 0 : index
    %c0_1 = arith.constant 0 : index
    %1 = vector.load %arg5[%c0, %c0_0, %c0_1] : memref<18x18x4xf32, #tpu.memory_space<vmem>>, vector<18x18x4xf32>
    tpu.vector_store %arg5[%c0, %c0_0, %c0_1], %0 {strides = array<i32>} : memref<18x18x4xf32, #tpu.memory_space<vmem>>, vector<18x18x4xf32>,
    %c0_2 = arith.constant 0 : index
    %c0_3 = arith.constant 0 : index
    %c0_4 = arith.constant 0 : index
    %c0_5 = arith.constant 0 : index
    %2 = vector.load %arg1[%c0_2, %c0_3, %c0_4, %c0_5] : memref<1x16x16x4xf32, #tpu.memory_space<vmem>>, vector<1x16x16x4xf32>
    %3 = vector.shape_cast %2 : vector<1x16x16x4xf32> to vector<16x16x4xf32>
    %c1 = arith.constant 1 : index
    %c1_6 = arith.constant 1 : index
    %c0_7 = arith.constant 0 : index
    %4 = vector.load %arg5[%c1, %c1_6, %c0_7] : memref<18x18x4xf32, #tpu.memory_space<vmem>>, vector<16x16x4xf32>
    tpu.vector_store %arg5[%c1, %c1_6, %c0_7], %3 {strides = array<i32>} : memref<18x18x4xf32, #tpu.memory_space<vmem>>, vector<16x16x4xf32>,
    %c0_8 = arith.constant 0 : index
    %c0_9 = arith.constant 0 : index
    %c0_10 = arith.constant 0 : index
    %5 = vector.load %arg5[%c0_8, %c0_9, %c0_10] : memref<18x18x4xf32, #tpu.memory_space<vmem>>, vector<18x18x4xf32>
    %6 = vector.extract_strided_slice %5 {offsets = [0, 0, 0], sizes = [16, 16, 4], strides = [1, 1, 1]} : vector<18x18x4xf32> to vector<16x16x4xf32>
    %7 = vector.shape_cast %6 : vector<16x16x4xf32> to vector<256x4xf32>
    %c0_11 = arith.constant 0 : index
    %c0_12 = arith.constant 0 : index
    %8 = vector.load %arg6[%c0_11, %c0_12] : memref<256x36xf32, #tpu.memory_space<vmem>>, vector<256x4xf32>
    tpu.vector_store %arg6[%c0_11, %c0_12], %7 {strides = array<i32>} : memref<256x36xf32, #tpu.memory_space<vmem>>, vector<256x4xf32>,
    %9 = vector.extract_strided_slice %5 {offsets = [0, 1, 0], sizes = [16, 16, 4], strides = [1, 1, 1]} : vector<18x18x4xf32> to vector<16x16x4xf32>
    %10 = vector.shape_cast %9 : vector<16x16x4xf32> to vector<256x4xf32>
    %c0_13 = arith.constant 0 : index
    %c4 = arith.constant 4 : index
    %11 = vector.load %arg6[%c0_13, %c4] : memref<256x36xf32, #tpu.memory_space<vmem>>, vector<256x4xf32>
    tpu.vector_store %arg6[%c0_13, %c4], %10 {strides = array<i32>} : memref<256x36xf32, #tpu.memory_space<vmem>>, vector<256x4xf32>,
    %12 = vector.extract_strided_slice %5 {offsets = [0, 2, 0], sizes = [16, 16, 4], strides = [1, 1, 1]} : vector<18x18x4xf32> to vector<16x16x4xf32>
    %13 = vector.shape_cast %12 : vector<16x16x4xf32> to vector<256x4xf32>
    %c0_14 = arith.constant 0 : index
    %c8 = arith.constant 8 : index
    %14 = vector.load %arg6[%c0_14, %c8] : memref<256x36xf32, #tpu.memory_space<vmem>>, vector<256x4xf32>
    tpu.vector_store %arg6[%c0_14, %c8], %13 {strides = array<i32>} : memref<256x36xf32, #tpu.memory_space<vmem>>, vector<256x4xf32>,
    %15 = vector.extract_strided_slice %5 {offsets = [1, 0, 0], sizes = [16, 16, 4], strides = [1, 1, 1]} : vector<18x18x4xf32> to vector<16x16x4xf32>
    %16 = vector.shape_cast %15 : vector<16x16x4xf32> to vector<256x4xf32>
    %c0_15 = arith.constant 0 : index
    %c12 = arith.constant 12 : index
    %17 = vector.load %arg6[%c0_15, %c12] : memref<256x36xf32, #tpu.memory_space<vmem>>, vector<256x4xf32>
    tpu.vector_store %arg6[%c0_15, %c12], %16 {strides = array<i32>} : memref<256x36xf32, #tpu.memory_space<vmem>>, vector<256x4xf32>,
    %18 = vector.extract_strided_slice %5 {offsets = [1, 1, 0], sizes = [16, 16, 4], strides = [1, 1, 1]} : vector<18x18x4xf32> to vector<16x16x4xf32>
    %19 = vector.shape_cast %18 : vector<16x16x4xf32> to vector<256x4xf32>
    %c0_16 = arith.constant 0 : index
    %c16 = arith.constant 16 : index
    %20 = vector.load %arg6[%c0_16, %c16] : memref<256x36xf32, #tpu.memory_space<vmem>>, vector<256x4xf32>
    tpu.vector_store %arg6[%c0_16, %c16], %19 {strides = array<i32>} : memref<256x36xf32, #tpu.memory_space<vmem>>, vector<256x4xf32>,
    %21 = vector.extract_strided_slice %5 {offsets = [1, 2, 0], sizes = [16, 16, 4], strides = [1, 1, 1]} : vector<18x18x4xf32> to vector<16x16x4xf32>
    %22 = vector.shape_cast %21 : vector<16x16x4xf32> to vector<256x4xf32>
    %c0_17 = arith.constant 0 : index
    %c20 = arith.constant 20 : index
    %23 = vector.load %arg6[%c0_17, %c20] : memref<256x36xf32, #tpu.memory_space<vmem>>, vector<256x4xf32>
    tpu.vector_store %arg6[%c0_17, %c20], %22 {strides = array<i32>} : memref<256x36xf32, #tpu.memory_space<vmem>>, vector<256x4xf32>,
    %24 = vector.extract_strided_slice %5 {offsets = [2, 0, 0], sizes = [16, 16, 4], strides = [1, 1, 1]} : vector<18x18x4xf32> to vector<16x16x4xf32>
    %25 = vector.shape_cast %24 : vector<16x16x4xf32> to vector<256x4xf32>
    %c0_18 = arith.constant 0 : index
    %c24 = arith.constant 24 : index
    %26 = vector.load %arg6[%c0_18, %c24] : memref<256x36xf32, #tpu.memory_space<vmem>>, vector<256x4xf32>
    tpu.vector_store %arg6[%c0_18, %c24], %25 {strides = array<i32>} : memref<256x36xf32, #tpu.memory_space<vmem>>, vector<256x4xf32>,
    %27 = vector.extract_strided_slice %5 {offsets = [2, 1, 0], sizes = [16, 16, 4], strides = [1, 1, 1]} : vector<18x18x4xf32> to vector<16x16x4xf32>
    %28 = vector.shape_cast %27 : vector<16x16x4xf32> to vector<256x4xf32>
    %c0_19 = arith.constant 0 : index
    %c28 = arith.constant 28 : index
    %29 = vector.load %arg6[%c0_19, %c28] : memref<256x36xf32, #tpu.memory_space<vmem>>, vector<256x4xf32>
    tpu.vector_store %arg6[%c0_19, %c28], %28 {strides = array<i32>} : memref<256x36xf32, #tpu.memory_space<vmem>>, vector<256x4xf32>,
    %30 = vector.extract_strided_slice %5 {offsets = [2, 2, 0], sizes = [16, 16, 4], strides = [1, 1, 1]} : vector<18x18x4xf32> to vector<16x16x4xf32>
    %31 = vector.shape_cast %30 : vector<16x16x4xf32> to vector<256x4xf32>
    %c0_20 = arith.constant 0 : index
    %c32 = arith.constant 32 : index
    %32 = vector.load %arg6[%c0_20, %c32] : memref<256x36xf32, #tpu.memory_space<vmem>>, vector<256x4xf32>
    tpu.vector_store %arg6[%c0_20, %c32], %31 {strides = array<i32>} : memref<256x36xf32, #tpu.memory_space<vmem>>, vector<256x4xf32>,
    %c0_21 = arith.constant 0 : index
    %c0_22 = arith.constant 0 : index
    %33 = vector.load %arg6[%c0_21, %c0_22] : memref<256x36xf32, #tpu.memory_space<vmem>>, vector<256x36xf32>
    %34 = arith.truncf %33 : vector<256x36xf32> to vector<256x36xbf16>
    %c0_23 = arith.constant 0 : index
    %c0_24 = arith.constant 0 : index
    %35 = vector.load %arg2[%c0_23, %c0_24] : memref<36x8xbf16, #tpu.memory_space<vmem>>, vector<36x8xbf16>
    %cst_25 = arith.constant dense<0.000000e+00> : vector<256x8xf32>
    %36 = tpu.matmul %34, %35, %cst_25 {dimension_numbers = #tpu.dot_dimension_numbers<[1], [0], [0], [1], [0, 0, 1, 1], [], []>} : vector<256x36xbf16>, vector<36x8xbf16>, vector<256x8xf32> -> vector<256x8xf32>
    %c0_26 = arith.constant 0 : index
    %c0_27 = arith.constant 0 : index
    %c0_28 = arith.constant 0 : index
    %37 = vector.load %arg3[%c0_26, %c0_27, %c0_28] : memref<1x256x8xf32, #tpu.memory_space<vmem>>, vector<1x256x8xf32>
    %38 = vector.shape_cast %37 : vector<1x256x8xf32> to vector<256x8xf32>
    %39 = vector.shape_cast %36 : vector<256x8xf32> to vector<1x256x8xf32>
    tpu.vector_store %arg3[%c0_26, %c0_27, %c0_28], %39 {strides = array<i32>} : memref<1x256x8xf32, #tpu.memory_space<vmem>>, vector<1x256x8xf32>,
    %cst_29 = arith.constant dense<0.000000e+00> : vector<8xf32>
    %40 = vector.multi_reduction <add>, %36, %cst_29 [0] : vector<256x8xf32> to vector<8xf32>
    %41 = vector.shape_cast %40 : vector<8xf32> to vector<1x8xf32>
    %c0_30 = arith.constant 0 : index
    %c0_31 = arith.constant 0 : index
    %c0_32 = arith.constant 0 : index
    %42 = vector.load %arg4[%c0_30, %c0_31, %c0_32] : memref<1x2x8xf32, #tpu.memory_space<vmem>>, vector<1x1x8xf32>
    %43 = vector.shape_cast %42 : vector<1x1x8xf32> to vector<1x8xf32>
    %44 = vector.shape_cast %41 : vector<1x8xf32> to vector<1x1x8xf32>
    tpu.vector_store %arg4[%c0_30, %c0_31, %c0_32], %44 {strides = array<i32>} : memref<1x2x8xf32, #tpu.memory_space<vmem>>, vector<1x1x8xf32>,
    %45 = arith.mulf %36, %36 : vector<256x8xf32>
    %cst_33 = arith.constant dense<0.000000e+00> : vector<8xf32>
    %46 = vector.multi_reduction <add>, %45, %cst_33 [0] : vector<256x8xf32> to vector<8xf32>
    %47 = vector.shape_cast %46 : vector<8xf32> to vector<1x8xf32>
    %c0_34 = arith.constant 0 : index
    %c1_35 = arith.constant 1 : index
    %c0_36 = arith.constant 0 : index
    %48 = vector.load %arg4[%c0_34, %c1_35, %c0_36] : memref<1x2x8xf32, #tpu.memory_space<vmem>>, vector<1x1x8xf32>
    %49 = vector.shape_cast %48 : vector<1x1x8xf32> to vector<1x8xf32>
    %50 = vector.shape_cast %47 : vector<1x8xf32> to vector<1x1x8xf32>
    tpu.vector_store %arg4[%c0_34, %c1_35, %c0_36], %50 {strides = array<i32>} : memref<1x2x8xf32, #tpu.memory_space<vmem>>, vector<1x1x8xf32>,
    return
  }
  func.func @transform_0(%arg0: i32) -> (i32, i32, i32, i32) {
    %c0_i32 = arith.constant 0 : i32
    %c0_i32_0 = arith.constant 0 : i32
    %c0_i32_1 = arith.constant 0 : i32
    %c0_i32_2 = arith.constant 0 : i32
    return %arg0, %c0_i32, %c0_i32_0, %c0_i32_1 : i32, i32, i32, i32
  }
  func.func @transform_1(%arg0: i32) -> (i32, i32) {
    %c0_i32 = arith.constant 0 : i32
    %c0_i32_0 = arith.constant 0 : i32
    %c0_i32_1 = arith.constant 0 : i32
    return %c0_i32, %c0_i32_0 : i32, i32
  }
  func.func @transform_2(%arg0: i32) -> (i32, i32, i32) {
    %c0_i32 = arith.constant 0 : i32
    %c0_i32_0 = arith.constant 0 : i32
    %c0_i32_1 = arith.constant 0 : i32
    return %arg0, %c0_i32, %c0_i32_0 : i32, i32, i32
  }
  func.func @transform_3(%arg0: i32) -> (i32, i32, i32) {
    %c0_i32 = arith.constant 0 : i32
    %c0_i32_0 = arith.constant 0 : i32
    %c0_i32_1 = arith.constant 0 : i32
    return %arg0, %c0_i32, %c0_i32_0 : i32, i32, i32
  }
}

</mosaic_0001>

<bundles_post_ra>
// kernel: tpu_custom_call.1
= control target key start
LH: loop header
LB: loop body
LE: loop exit
PB: predicated region body
PF: predicated region fallthrough
CT: control target
= control target key end

     0   :  { %9 = vsyncpa [#allocation5], 0  ;;  %s4072_s0 = inlined_call_operand.vmem [shape: f32[2,16,16,4], index: 0, kind: input, shape index: {}]   ;;  %s4073_s1 = inlined_call_operand.vmem [shape: bf16[36,8], index: 1, kind: input, shape index: {}]   ;;  %s4074_s2 = inlined_call_operand.vmem [shape: f32[2,256,8], index: 2, kind: output, shape index: {0}]   ;;  %s4075_s3 = inlined_call_operand.hbm [shape: f32[2,2,8], index: 3, kind: output, shape index: {1}]  }
   0x1   :  { %11 = vsyncpa [#allocation5 + $0x1], 0  ;;  %s2496_s12 = smov 0   ;;  %s2498_s13 = smov 0  }
   0x2   :  { %s2500_s14 = smov 0   ;;  %s2502_s15 = smov 0  }
   0x3 LB: > { %s2517_s16 = sadd.s32 4294967295, %s2464_s15   ;;  %s2252_s17 = sadd.s32 4294967294, %s2464_s15   ;;  %s2464_s15 = sphi %s2502_s15, %s4221_s15   ;;  %s2460_s14 = sphi %s2500_s14, %s4220_s14   ;;  %s2456_s13 = sphi %s2498_s13, %s4219_s13   ;;  %s2452_s12 = sphi %s2496_s12, %s4218_s12  }
   0x4   : > { %s2521_s18 = sadd.s32 1, %s2464_s15   ;;  %s97_s19 = sadd.s32 1, %s2460_s14 }
   0x5   : > { %s94_s20 = ssub.s32 %s2464_s15, %s2521_s18  ;;  %p107_p0 = scmp.ne.s32.totalorder %s2460_s14, %s2456_s13 }
   0x6   : > { %p95_p1 = scmp.eq.s32.totalorder %s94_s20, 0  ;;  %p108_p2 = scmp.eq.s32.totalorder %s2517_s16, 1 }
   0x7   : > { %p113_p3 = scmp.ne.s32.totalorder %s2456_s13, %s2452_s12  ;;  %p114_p4 = scmp.eq.s32.totalorder %s2252_s17, 1 }
   0x8   : > { %s2532_s21 = scalar_select %p95_p1, %s2460_s14, %s97_s19  }
   0x9   : > { %p2534_p5 = por %p108_p2, %p107_p0  ;;  %p2538_p6 = por %p114_p4, %p113_p3 }
   0xa   : > { %p2255_p7 = scmp.ge.s32.totalorder %s2464_s15, 1  ;;  %p143_p8 = scmp.lt.s32.totalorder %s2464_s15, 3 }
   0xc   : > { %p144_p9 = pnand %p2255_p7, %p143_p8 }
   0xe   : > { %147 = sbr.rel (%p144_p9) target bundleno = 943 (0x3af), region = 28 }
  0x15   : > { %vm183_vm0 = vcmask 31744   ;;  %vm186_vm1 = vcmask 25600   ;;  %p172_p10 = scmp.lt.s32.totalorder %s2517_s16, 1  ;;  %v2466_v0 = vmov 0.0   ;;  %vm438_vm2 = vcmask 1046528   ;;  %s2467_s29 = smov 4  }
  0x16   : > { %184 = vst.msk [vmem:[#allocation2] sm:$0xff] %vm183_vm0, %v2466_v0  ;;  %185 = vst.msk [vmem:[#allocation2 + $0x8] sm:$0xff] %vm183_vm0, %v2466_v0  ;;  %vm648_vm3 = vcmask 1045504   ;;  %s2468_s30 = smov 8   ;;  %vm615_vm4 = vcmask 64544   ;;  %s2469_s4 = smov 12  }
  0x17   : > { %188 = vst.msk [vmem:[#allocation2 + $0x18] sm:$0xff] %vm183_vm0, %v2466_v0  ;;  %189 = vst.msk [vmem:[#allocation2 + $0x20] sm:$0xff] %vm183_vm0, %v2466_v0  ;;  %s2602_s24 = scalar_select %p172_p10, %s2517_s16, 1  ;;  %vm825_vm5 = vcmask 97344   ;;  %vm1775_vm6 = vcmask 1041408   ;;  %vm956_vm7 = vcmask 130144  }
  0x18   : > { %191 = vst.msk [vmem:[#allocation2 + $0x30] sm:$0xff] %vm183_vm0, %v2466_v0  ;;  %192 = vst.msk [vmem:[#allocation2 + $0x38] sm:$0xff] %vm183_vm0, %v2466_v0  ;;  %s2470_s5 = smov 16   ;;  %s2471_s6 = smov 20   ;;  %vm1091_vm8 = vcmask 162944   ;;  %vm1225_vm9 = vcmask 195744  }
  0x19   : > { %194 = vst.msk [vmem:[#allocation2 + $0x48] sm:$0xff] %vm183_vm0, %v2466_v0  ;;  %195 = vst.msk [vmem:[#allocation2 + $0x50] sm:$0xff] %vm183_vm0, %v2466_v0  ;;  %s2284_s25 = sshll.u32 %s2602_s24, 8  ;;  %s2472_s7 = smov 24   ;;  %vm1356_vm10 = vcmask 228544   ;;  %vm1491_vm11 = vcmask 261344  }
  0x1a   : > { %197 = vst.msk [vmem:[#allocation2 + $0x60] sm:$0xff] %vm183_vm0, %v2466_v0  ;;  %198 = vst.msk [vmem:[#allocation2 + $0x68] sm:$0xff] %vm183_vm0, %v2466_v0  ;;  %s2610_s28 = scalar_lea.vmem %s4072_s0, %s2284_s25  ;;  %s2473_s10 = smov 28   ;;  %vm1625_vm12 = vcmask 294144   ;;  %vm1726_vm13 = vcmask 293888   ;;  %vm1940_vm14 = vcmask 64512  }
  0x1b   : > { %200 = vst.msk [vmem:[#allocation2 + $0x78] sm:$0xff] %vm183_vm0, %v2466_v0  ;;  %201 = vst.msk [vmem:[#allocation2 + $0x80] sm:$0xff] %vm183_vm0, %v2466_v0  ;;  %v239_v1 = vld [vmem:[%s2610_s28] sm:$0xff]  ;;  %v240_v2 = vld [vmem:[%s2610_s28 + $0x8] sm:$0xff]  ;;  %s2474_s26 = smov 32   ;;  %s169_s24 = sand.u32 1, %s2456_s13  }
  0x1c   : > { %203 = vst.msk [vmem:[#allocation2 + $0x90] sm:$0xff] %vm183_vm0, %v2466_v0  ;;  %204 = vst.msk [vmem:[#allocation2 + $0x98] sm:$0xff] %vm183_vm0, %v2466_v0  ;;  %v241_v3 = vld [vmem:[%s2610_s28 + $0x10] sm:$0xff]  ;;  %v242_v4 = vld [vmem:[%s2610_s28 + $0x18] sm:$0xff]  ;;  %vm2042_vm15 = vcmask 57344   ;;  %s2152_s9 = scalar_lea.sflag [#allocation5], %s169_s24 }
  0x1d   : > { %206 = vst.msk [vmem:[#allocation2 + $0xa8] sm:$0xff] %vm183_vm0, %v2466_v0  ;;  %207 = vst.msk [vmem:[#allocation2 + $0xb0] sm:$0xff] %vm183_vm0, %v2466_v0  ;;  %v243_v5 = vld [vmem:[%s2610_s28 + $0x20] sm:$0xff]  ;;  %v244_v6 = vld [vmem:[%s2610_s28 + $0x28] sm:$0xff] }
  0x1e   : > { %209 = vst.msk [vmem:[#allocation2 + $0xc0] sm:$0xff] %vm183_vm0, %v2466_v0  ;;  %210 = vst.msk [vmem:[#allocation2 + $0xc8] sm:$0xff] %vm183_vm0, %v2466_v0  ;;  %v304_v7 = vld [vmem:[#allocation2] sm:$0xff]  ;;  %v305_v8 = vld [vmem:[#allocation2 + $0x8] sm:$0xff] }
  0x1f   : > { %212 = vst.msk [vmem:[#allocation2 + $0xd8] sm:$0xff] %vm183_vm0, %v2466_v0  ;;  %213 = vst.msk [vmem:[#allocation2 + $0xe0] sm:$0xff] %vm183_vm0, %v2466_v0  ;;  %v439_v10 = vrot.slane %v304_v7, 1  ;;  %v440_v11 = vrot.slane %v305_v8, 1  ;;  %v245_v13 = vld [vmem:[%s2610_s28 + $0x30] sm:$0xff]  ;;  %v246_v14 = vld [vmem:[%s2610_s28 + $0x38] sm:$0xff] }
  0x20   : > { %215 = vst.msk [vmem:[#allocation2 + $0xf0] sm:$0xff] %vm183_vm0, %v2466_v0  ;;  %216 = vst.msk [vmem:[#allocation2 + $0xf8] sm:$0xff] %vm183_vm0, %v2466_v0  ;;  %v247_v15 = vld [vmem:[%s2610_s28 + $0x40] sm:$0xff]  ;;  %v248_v16 = vld [vmem:[%s2610_s28 + $0x48] sm:$0xff]  ;;  %v649_v19 = vrot.slane %v304_v7, 2  ;;  %v650_v20 = vrot.slane %v305_v8, 2 }
  0x21   : > { %218 = vst.msk [vmem:[#allocation2 + $0x108] sm:$0xff] %vm183_vm0, %v2466_v0  ;;  %219 = vst.msk [vmem:[#allocation2 + $0x110] sm:$0xff] %vm183_vm0, %v2466_v0  ;;  %v249_v17 = vld [vmem:[%s2610_s28 + $0x50] sm:$0xff]  ;;  %v250_v18 = vld [vmem:[%s2610_s28 + $0x58] sm:$0xff]  ;;  %v441_v22 = vsel %vm438_vm2, %v439_v10, %v440_v11 }
  0x22   : > { %221 = vst.msk [vmem:[#allocation2 + $0x120] sm:$0xff] %vm183_vm0, %v2466_v0  ;;  %222 = vst.msk [vmem:[#allocation2 + $0x128] sm:$0xff] %vm183_vm0, %v2466_v0  ;;  %v251_v23 = vld [vmem:[%s2610_s28 + $0x60] sm:$0xff]  ;;  %v252_v24 = vld [vmem:[%s2610_s28 + $0x68] sm:$0xff]  ;;  %519 = vrot.lane.b32.xlu0 %v441_v22, %s2467_s29  ;;  %v2650_v29 = vsel %vm648_vm3, %v649_v19, %v650_v20 }
  0x23   : > { %224 = vst.msk [vmem:[#allocation2 + $0x138] sm:$0xff] %vm183_vm0, %v2466_v0  ;;  %225 = vst.msk [vmem:[#allocation2 + $0x140] sm:$0xff] %vm183_vm0, %v2466_v0  ;;  %v253_v25 = vld [vmem:[%s2610_s28 + $0x70] sm:$0xff]  ;;  %v254_v26 = vld [vmem:[%s2610_s28 + $0x78] sm:$0xff] }
  0x24   : > { %227 = vst.msk [vmem:[#allocation2 + $0x150] sm:$0xff] %vm183_vm0, %v2466_v0  ;;  %228 = vst.msk [vmem:[#allocation2 + $0x158] sm:$0xff] %vm183_vm0, %v2466_v0  ;;  %v255_v27 = vld [vmem:[%s2610_s28 + $0x80] sm:$0xff]  ;;  %v256_v28 = vld [vmem:[%s2610_s28 + $0x88] sm:$0xff] }
  0x25   : > { %230 = vst.msk [vmem:[#allocation2 + $0x168] sm:$0xff] %vm183_vm0, %v2466_v0  ;;  %231 = vst.msk [vmem:[#allocation2 + $0x170] sm:$0xff] %vm183_vm0, %v2466_v0  ;;  %v257_v32 = vld [vmem:[%s2610_s28 + $0x90] sm:$0xff]  ;;  %v258_v33 = vld [vmem:[%s2610_s28 + $0x98] sm:$0xff] }
  0x26   : > { %233 = vst.msk [vmem:[#allocation2 + $0x180] sm:$0xff] %vm183_vm0, %v2466_v0  ;;  %234 = vst.msk [vmem:[#allocation2 + $0x188] sm:$0xff] %vm183_vm0, %v2466_v0  ;;  %v259_v34 = vld [vmem:[%s2610_s28 + $0xa0] sm:$0xff]  ;;  %v265_v22 = vld [vmem:[%s2610_s28 + $0xd0] sm:$0xff] }
  0x27   : > { %236 = vst.msk [vmem:[#allocation2 + $0x198] sm:$0xff] %vm183_vm0, %v2466_v0  ;;  %237 = vst.msk [vmem:[#allocation2 + $0x1a0] sm:$0xff] %vm183_vm0, %v2466_v0 }
  0x28   : > { %187 = vst.msk [vmem:[#allocation2 + $0x10] sm:$0x3] %vm186_vm1, %v2466_v0  ;;  %190 = vst.msk [vmem:[#allocation2 + $0x28] sm:$0x3] %vm186_vm1, %v2466_v0 }
  0x29   : > { %193 = vst.msk [vmem:[#allocation2 + $0x40] sm:$0x3] %vm186_vm1, %v2466_v0  ;;  %196 = vst.msk [vmem:[#allocation2 + $0x58] sm:$0x3] %vm186_vm1, %v2466_v0 }
  0x2a   : > { %199 = vst.msk [vmem:[#allocation2 + $0x70] sm:$0x3] %vm186_vm1, %v2466_v0  ;;  %202 = vst.msk [vmem:[#allocation2 + $0x88] sm:$0x3] %vm186_vm1, %v2466_v0 }
  0x2b   : > { %205 = vst.msk [vmem:[#allocation2 + $0xa0] sm:$0x3] %vm186_vm1, %v2466_v0  ;;  %208 = vst.msk [vmem:[#allocation2 + $0xb8] sm:$0x3] %vm186_vm1, %v2466_v0 }
  0x2c   : > { %211 = vst.msk [vmem:[#allocation2 + $0xd0] sm:$0x3] %vm186_vm1, %v2466_v0  ;;  %214 = vst.msk [vmem:[#allocation2 + $0xe8] sm:$0x3] %vm186_vm1, %v2466_v0 }
  0x2d   : > { %217 = vst.msk [vmem:[#allocation2 + $0x100] sm:$0x3] %vm186_vm1, %v2466_v0  ;;  %220 = vst.msk [vmem:[#allocation2 + $0x118] sm:$0x3] %vm186_vm1, %v2466_v0 }
  0x2e   : > { %223 = vst.msk [vmem:[#allocation2 + $0x130] sm:$0x3] %vm186_vm1, %v2466_v0  ;;  %226 = vst.msk [vmem:[#allocation2 + $0x148] sm:$0x3] %vm186_vm1, %v2466_v0 }
  0x2f   : > { %229 = vst.msk [vmem:[#allocation2 + $0x160] sm:$0x3] %vm186_vm1, %v2466_v0  ;;  %232 = vst.msk [vmem:[#allocation2 + $0x178] sm:$0x3] %vm186_vm1, %v2466_v0  ;;  %v306_v9 = vld [vmem:[#allocation2 + $0x10] sm:$0x3] }
  0x30   : > { %235 = vst.msk [vmem:[#allocation2 + $0x190] sm:$0x3] %vm186_vm1, %v2466_v0  ;;  %238 = vst.msk [vmem:[#allocation2 + $0x1a8] sm:$0x3] %vm186_vm1, %v2466_v0  ;;  %v442_v12 = vrot.slane %v306_v9, 1  ;;  %v652_v21 = vrot.slane %v306_v9, 2 }
  0x31   : > { %272 = vst.msk [vmem:[#allocation2 + $0x19] sm:$0xff] %vm183_vm0, %v239_v1  ;;  %273 = vst.msk [vmem:[#allocation2 + $0x21] sm:$0xff] %vm183_vm0, %v240_v2 }
  0x32   : > { %274 = vst.msk [vmem:[#allocation2 + $0x31] sm:$0xff] %vm183_vm0, %v241_v3  ;;  %275 = vst.msk [vmem:[#allocation2 + $0x39] sm:$0xff] %vm183_vm0, %v242_v4  ;;  %v2653_v30 = vsel %vm648_vm3, %v650_v20, %v652_v21  ;;  %v443_v31 = vsel %vm438_vm2, %v440_v11, %v442_v12  ;;  %v260_v11 = vld [vmem:[%s2610_s28 + $0xa8] sm:$0xff] }
  0x33   : > { %276 = vst.msk [vmem:[#allocation2 + $0x49] sm:$0xff] %vm183_vm0, %v243_v5  ;;  %277 = vst.msk [vmem:[#allocation2 + $0x51] sm:$0xff] %vm183_vm0, %v244_v6  ;;  %521 = vrot.lane.b32.xlu0 %v443_v31, %s2467_s29  ;;  %v264_v21 = vld [vmem:[%s2610_s28 + $0xc8] sm:$0xff] }
  0x34   : > { %358 = vst.msk [vmem:[#allocation3] sm:$0xff] %vm183_vm0, %v304_v7  ;;  %359 = vst.msk [vmem:[#allocation3 + $0x8] sm:$0xff] %vm183_vm0, %v305_v8 }
  0x35   : > { %278 = vst.msk [vmem:[#allocation2 + $0x61] sm:$0xff] %vm183_vm0, %v245_v13  ;;  %279 = vst.msk [vmem:[#allocation2 + $0x69] sm:$0xff] %vm183_vm0, %v246_v14 }
  0x36   : > { %280 = vst.msk [vmem:[#allocation2 + $0x79] sm:$0xff] %vm183_vm0, %v247_v15  ;;  %281 = vst.msk [vmem:[#allocation2 + $0x81] sm:$0xff] %vm183_vm0, %v248_v16  ;;  %v261_v16 = vld [vmem:[%s2610_s28 + $0xb0] sm:$0xff] }
  0x37   : > { %282 = vst.msk [vmem:[#allocation2 + $0x91] sm:$0xff] %vm183_vm0, %v249_v17  ;;  %283 = vst.msk [vmem:[#allocation2 + $0x99] sm:$0xff] %vm183_vm0, %v250_v18  ;;  %v262_v17 = vld [vmem:[%s2610_s28 + $0xb8] sm:$0xff]  ;;  %v263_v18 = vld [vmem:[%s2610_s28 + $0xc0] sm:$0xff] }
  0x38   : > { %284 = vst.msk [vmem:[#allocation2 + $0xa9] sm:$0xff] %vm183_vm0, %v251_v23  ;;  %285 = vst.msk [vmem:[#allocation2 + $0xb1] sm:$0xff] %vm183_vm0, %v252_v24  ;;  %v2662_v35 = vld [vmem:[#allocation2 + $0x18] sm:$0xff]  ;;  %v2664_v36 = vld [vmem:[#allocation2 + $0x20] sm:$0xff] }
  0x39   : > { %286 = vst.msk [vmem:[#allocation2 + $0xc1] sm:$0xff] %vm183_vm0, %v253_v25  ;;  %287 = vst.msk [vmem:[#allocation2 + $0xc9] sm:$0xff] %vm183_vm0, %v254_v26  ;;  %v2666_v37 = vld [vmem:[#allocation2 + $0x30] sm:$0xff]  ;;  %v444_v38 = vrot.slane %v2662_v35, 1  ;;  %v445_v39 = vrot.slane %v2664_v36, 1  ;;  %v2677_v40 = vld [vmem:[#allocation2 + $0x38] sm:$0xff] }
  0x3a   : > { %288 = vst.msk [vmem:[#allocation2 + $0xd9] sm:$0xff] %vm183_vm0, %v255_v27  ;;  %289 = vst.msk [vmem:[#allocation2 + $0xe1] sm:$0xff] %vm183_vm0, %v256_v28  ;;  %v449_v41 = vrot.slane %v2666_v37, 1  ;;  %v2682_v42 = vld [vmem:[#allocation2 + $0x28] sm:$0x3]  ;;  %v450_v43 = vrot.slane %v2677_v40, 1 }
  0x3b   : > { %290 = vst.msk [vmem:[#allocation2 + $0xf1] sm:$0xff] %vm183_vm0, %v257_v32  ;;  %291 = vst.msk [vmem:[#allocation2 + $0xf9] sm:$0xff] %vm183_vm0, %v258_v33  ;;  %v447_v44 = vrot.slane %v2682_v42, 1  ;;  %v2689_v45 = vld [vmem:[#allocation2 + $0x48] sm:$0xff]  ;;  %v2691_v46 = vld [vmem:[#allocation2 + $0x50] sm:$0xff]  ;;  %v2696_v48 = vsel %vm438_vm2, %v444_v38, %v445_v39 }
  0x3c   : > { %292 = vst.msk [vmem:[#allocation2 + $0x109] sm:$0xff] %vm183_vm0, %v259_v34  ;;  %360 = vst.msk [vmem:[#allocation3 + $0x10] sm:$0xff] %vm183_vm0, %v2662_v35  ;;  %v2693_v47 = vld [vmem:[#allocation2 + $0x40] sm:$0x3]  ;;  %v454_v49 = vrot.slane %v2689_v45, 1  ;;  %v455_v50 = vrot.slane %v2691_v46, 1  ;;  %523 = vrot.lane.b32.xlu1 %v2696_v48, %s2467_s29  ;;  %v2713_v54 = vsel %vm438_vm2, %v449_v41, %v450_v43 }
  0x3d   : > { %361 = vst.msk [vmem:[#allocation3 + $0x18] sm:$0xff] %vm183_vm0, %v2664_v36  ;;  %362 = vst.msk [vmem:[#allocation3 + $0x20] sm:$0xff] %vm183_vm0, %v2666_v37  ;;  %v2704_v51 = vld [vmem:[#allocation2 + $0x60] sm:$0xff]  ;;  %v2706_v52 = vld [vmem:[#allocation2 + $0x68] sm:$0xff]  ;;  %v2726_v57 = vsel %vm438_vm2, %v445_v39, %v447_v44  ;;  %v452_v58 = vrot.slane %v2693_v47, 1  ;;  %527 = vrot.lane.b32.xlu0 %v2713_v54, %s2467_s29 }
  0x3e   : > { %363 = vst.msk [vmem:[#allocation3 + $0x28] sm:$0xff] %vm183_vm0, %v2677_v40  ;;  %364 = vst.msk [vmem:[#allocation3 + $0x30] sm:$0xff] %vm183_vm0, %v2689_v45  ;;  %v2708_v53 = vld [vmem:[#allocation2 + $0x78] sm:$0xff]  ;;  %v2719_v55 = vld [vmem:[#allocation2 + $0x80] sm:$0xff]  ;;  %v2748_v63 = vsel %vm438_vm2, %v454_v49, %v455_v50  ;;  %v459_v0 = vrot.slane %v2704_v51, 1  ;;  %v460_v1 = vrot.slane %v2706_v52, 1 }
  0x3f   : > { %365 = vst.msk [vmem:[#allocation3 + $0x38] sm:$0xff] %vm183_vm0, %v2691_v46  ;;  %366 = vst.msk [vmem:[#allocation3 + $0x40] sm:$0xff] %vm183_vm0, %v2704_v51  ;;  %v2723_v56 = vld [vmem:[#allocation2 + $0x90] sm:$0xff]  ;;  %v2731_v59 = vld [vmem:[#allocation2 + $0x98] sm:$0xff]  ;;  %v2765_v5 = vsel %vm438_vm2, %v450_v43, %v452_v58  ;;  %v464_v13 = vrot.slane %v2708_v53, 1  ;;  %v465_v14 = vrot.slane %v2719_v55, 1 }
  0x40   : > { %367 = vst.msk [vmem:[#allocation3 + $0x48] sm:$0xff] %vm183_vm0, %v2706_v52  ;;  %4148 = vst [vmem:[#allocation7_spill] sm:$0xff] %v2719_v55  ;;  %v2735_v60 = vld [vmem:[#allocation2 + $0xa8] sm:$0xff]  ;;  %v2739_v61 = vld [vmem:[#allocation2 + $0x58] sm:$0x3]  ;;  %525 = vrot.lane.b32.xlu1 %v2726_v57, %s2467_s29  ;;  %v2788_v12 = vsel %vm438_vm2, %v459_v0, %v460_v1  ;;  %v469_v28 = vrot.slane %v2723_v56, 1 }
  0x41   : > { %368 = vst.msk [vmem:[#allocation3 + $0x50] sm:$0xff] %vm183_vm0, %v2708_v53  ;;  %369 = vst.msk [vmem:[#allocation3 + $0x58] sm:$0xff] %vm183_vm0, %v2719_v55  ;;  %v2743_v62 = vld [vmem:[#allocation2 + $0xb0] sm:$0xff]  ;;  %v2754_v2 = vld [vmem:[#allocation2 + $0xc0] sm:$0xff]  ;;  %v457_v6 = vrot.slane %v2739_v61, 1  ;;  %531 = vrot.lane.b32.xlu0 %v2748_v63, %s2467_s29  ;;  %v2824_v27 = vsel %vm438_vm2, %v464_v13, %v465_v14  ;;  %v470_v31 = vrot.slane %v2731_v59, 1 }
  0x42   : > { %4149 = vst [vmem:[#allocation8_spill] sm:$0xff] %v2731_v59  ;;  %370 = vst.msk [vmem:[#allocation3 + $0x60] sm:$0xff] %vm183_vm0, %v2723_v56  ;;  %v2758_v3 = vld [vmem:[#allocation2 + $0xc8] sm:$0xff]  ;;  %v2762_v4 = vld [vmem:[#allocation2 + $0xd8] sm:$0xff]  ;;  %v474_v41 = vrot.slane %v2735_v60, 1  ;;  %v475_v43 = vrot.slane %v2743_v62, 1 }
  0x43   : > { %371 = vst.msk [vmem:[#allocation3 + $0x68] sm:$0xff] %vm183_vm0, %v2731_v59  ;;  %4150 = vst [vmem:[#allocation9_spill] sm:$0xff] %v2743_v62  ;;  %v2770_v7 = vld [vmem:[#allocation2 + $0xe0] sm:$0xff]  ;;  %v2774_v8 = vld [vmem:[#allocation2 + $0xf0] sm:$0xff]  ;;  %v2805_v19 = vsel %vm438_vm2, %v455_v50, %v457_v6  ;;  %v2843_v39 = vsel %vm438_vm2, %v469_v28, %v470_v31 }
  0x44   : > { %372 = vst.msk [vmem:[#allocation3 + $0x70] sm:$0xff] %vm183_vm0, %v2735_v60  ;;  %373 = vst.msk [vmem:[#allocation3 + $0x78] sm:$0xff] %vm183_vm0, %v2743_v62  ;;  %v2778_v9 = vld [vmem:[#allocation2 + $0x70] sm:$0x3]  ;;  %v2782_v10 = vld [vmem:[#allocation2 + $0xf8] sm:$0xff]  ;;  %529 = vrot.lane.b32.xlu1 %v2765_v5, %s2467_s29  ;;  %v485_v28 = vrot.slane %v2770_v7, 1 }
  0x45   : > { %4151 = vst [vmem:[#allocation10_spill] sm:$0xff] %v2758_v3  ;;  %374 = vst.msk [vmem:[#allocation3 + $0x80] sm:$0xff] %vm183_vm0, %v2754_v2  ;;  %v2795_v15 = vld [vmem:[#allocation2 + $0x108] sm:$0xff]  ;;  %v462_v20 = vrot.slane %v2778_v9, 1  ;;  %v266_v23 = vld [vmem:[%s2610_s28 + $0xd8] sm:$0xff]  ;;  %535 = vrot.lane.b32.xlu0 %v2788_v12, %s2467_s29 }
  0x46   : > { %375 = vst.msk [vmem:[#allocation3 + $0x88] sm:$0xff] %vm183_vm0, %v2758_v3  ;;  %4152 = vst [vmem:[#allocation11_spill] sm:$0xff] %v2770_v7  ;;  %v2816_v24 = vld [vmem:[#allocation2 + $0x88] sm:$0x3]  ;;  %v267_v25 = vld [vmem:[%s2610_s28 + $0xe0] sm:$0xff] }
  0x47   : > { %376 = vst.msk [vmem:[#allocation3 + $0x90] sm:$0xff] %vm183_vm0, %v2762_v4  ;;  %377 = vst.msk [vmem:[#allocation3 + $0x98] sm:$0xff] %vm183_vm0, %v2770_v7  ;;  %v268_v26 = vld [vmem:[%s2610_s28 + $0xe8] sm:$0xff]  ;;  %v2833_v32 = vsel %vm438_vm2, %v460_v1, %v462_v20  ;;  %v467_v33 = vrot.slane %v2816_v24, 1  ;;  %v2838_v34 = vld [vmem:[#allocation2 + $0xa0] sm:$0x3] }
  0x48   : > { %4153 = vst [vmem:[#allocation12_spill] sm:$0xff] %v2782_v10  ;;  %378 = vst.msk [vmem:[#allocation3 + $0xa0] sm:$0xff] %vm183_vm0, %v2774_v8  ;;  %533 = vrot.lane.b32.xlu1 %v2805_v19, %s2467_s29  ;;  %v472_v0 = vrot.slane %v2838_v34, 1 }
  0x49   : > { %4154 = vst [vmem:[#allocation13_spill] sm:$0xff] %v2788_v12  ;;  %379 = vst.msk [vmem:[#allocation3 + $0xa8] sm:$0xff] %vm183_vm0, %v2782_v10  ;;  %539 = vrot.lane.b32.xlu0 %v2824_v27, %s2467_s29  ;;  %v2858_v58 = vsel %vm438_vm2, %v465_v14, %v467_v33 }
  0x4a   : > { %293 = vst.msk [vmem:[#allocation2 + $0x111] sm:$0xff] %vm183_vm0, %v260_v11  ;;  %380 = vst.msk [vmem:[#allocation3 + $0xb0] sm:$0xff] %vm183_vm0, %v2795_v15  ;;  %v2873_v11 = vld [vmem:[#allocation2 + $0xb8] sm:$0x3] }
  0x4b   : > { %294 = vst.msk [vmem:[#allocation2 + $0x121] sm:$0xff] %vm183_vm0, %v261_v16  ;;  %295 = vst.msk [vmem:[#allocation2 + $0x129] sm:$0xff] %vm183_vm0, %v262_v17  ;;  %v2884_v16 = vsel %vm438_vm2, %v474_v41, %v475_v43  ;;  %v479_v17 = vrot.slane %v2754_v2, 1  ;;  %v2919_v41 = vld [vmem:[#allocation2 + $0xe8] sm:$0x3] }
  0x4c   : > { %296 = vst.msk [vmem:[#allocation2 + $0x139] sm:$0xff] %vm183_vm0, %v263_v18  ;;  %297 = vst.msk [vmem:[#allocation2 + $0x141] sm:$0xff] %vm183_vm0, %v264_v21  ;;  %537 = vrot.lane.b32.xlu1 %v2833_v32, %s2467_s29  ;;  %v480_v18 = vrot.slane %v2758_v3, 1  ;;  %v2899_v21 = vsel %vm438_vm2, %v470_v31, %v472_v0 }
  0x4d   : > { %298 = vst.msk [vmem:[#allocation2 + $0x151] sm:$0xff] %vm183_vm0, %v265_v22  ;;  %299 = vst.msk [vmem:[#allocation2 + $0x159] sm:$0xff] %vm183_vm0, %v266_v23  ;;  %543 = vrot.lane.b32.xlu0 %v2843_v39, %s2467_s29  ;;  %v477_v22 = vrot.slane %v2873_v11, 1  ;;  %v2904_v23 = vld [vmem:[#allocation2 + $0xd0] sm:$0x3] }
  0x4e   : > { %4155 = vst [vmem:[#allocation14_spill] sm:$0xff] %v2824_v27  ;;  %300 = vst.msk [vmem:[#allocation2 + $0x169] sm:$0xff] %vm183_vm0, %v267_v25  ;;  %v2907_v25 = vsel %vm438_vm2, %v479_v17, %v480_v18  ;;  %v482_v33 = vrot.slane %v2904_v23, 1  ;;  %v489_v17 = vrot.slane %v2774_v8, 1 }
  0x4f   : > { %301 = vst.msk [vmem:[#allocation2 + $0x171] sm:$0xff] %vm183_vm0, %v268_v26  ;;  %4156 = vst [vmem:[#allocation15_spill] sm:$0xff] %v2833_v32  ;;  %v484_v26 = vrot.slane %v2762_v4, 1  ;;  %v2914_v31 = vsel %vm438_vm2, %v475_v43, %v477_v22  ;;  %v487_v22 = vrot.slane %v2919_v41, 1 }
  0x50   : > { %4158 = vst [vmem:[#allocation17_spill] sm:$0xff] %v2843_v39  ;;  %4160 = vst [vmem:[#allocation19_spill] sm:$0xff] %v2858_v58  ;;  %541 = vrot.lane.b32.xlu1 %v2858_v58, %s2467_s29  ;;  %v2929_v43 = vsel %vm438_vm2, %v480_v18, %v482_v33 }
  0x51   : > { %v2840_v38 = vld [vmem:[#allocation2 + $0x110] sm:$0xff]  ;;  %4164 = vst [vmem:[#allocation23_spill] sm:$0xff] %v2884_v16  ;;  %4165 = vst [vmem:[#allocation24_spill] sm:$0xff] %v2899_v21  ;;  %547 = vrot.lane.b32.xlu0 %v2884_v16, %s2467_s29  ;;  %v2922_v0 = vsel %vm438_vm2, %v484_v26, %v485_v28  ;;  %v490_v16 = vrot.slane %v2782_v10, 1  ;;  %v2944_v18 = vsel %vm438_vm2, %v485_v28, %v487_v22 }
  0x52   : > { %4157 = vst [vmem:[#allocation16_spill] sm:$0xff] %v2840_v38  ;;  %381 = vst.msk [vmem:[#allocation3 + $0xb8] sm:$0xff] %vm183_vm0, %v2840_v38  ;;  %v2851_v44 = vld [vmem:[#allocation2 + $0x120] sm:$0xff]  ;;  %v2853_v49 = vld [vmem:[#allocation2 + $0x128] sm:$0xff]  ;;  %v495_v39 = vrot.slane %v2840_v38, 1 }
  0x53   : > { %4159 = vst [vmem:[#allocation18_spill] sm:$0xff] %v2853_v49  ;;  %v2855_v50 = vld [vmem:[#allocation2 + $0x138] sm:$0xff]  ;;  %382 = vst.msk [vmem:[#allocation3 + $0xc0] sm:$0xff] %vm183_vm0, %v2851_v44  ;;  %v2865_v1 = vld [vmem:[#allocation2 + $0x140] sm:$0xff]  ;;  %v2937_v26 = vsel %vm438_vm2, %v489_v17, %v490_v16  ;;  %v500_v27 = vrot.slane %v2853_v49, 1 }
  0x54   : > { %383 = vst.msk [vmem:[#allocation3 + $0xc8] sm:$0xff] %vm183_vm0, %v2853_v49  ;;  %4161 = vst [vmem:[#allocation20_spill] sm:$0xff] %v2865_v1  ;;  %v2869_v6 = vld [vmem:[#allocation2 + $0x150] sm:$0xff]  ;;  %v2877_v13 = vld [vmem:[#allocation2 + $0x158] sm:$0xff]  ;;  %545 = vrot.lane.b32.xlu1 %v2899_v21, %s2467_s29  ;;  %v494_v21 = vrot.slane %v2795_v15, 1  ;;  %v505_v58 = vrot.slane %v2865_v1, 1 }
  0x55   : > { %384 = vst.msk [vmem:[#allocation3 + $0xd0] sm:$0xff] %vm183_vm0, %v2855_v50  ;;  %4162 = vst [vmem:[#allocation21_spill] sm:$0xff] %v2869_v6  ;;  %v2881_v14 = vld [vmem:[#allocation2 + $0x168] sm:$0xff]  ;;  %551 = vrot.lane.b32.xlu0 %v2907_v25, %s2467_s29  ;;  %v510_v12 = vrot.slane %v2877_v13, 1 }
  0x56   : > { %385 = vst.msk [vmem:[#allocation3 + $0xd8] sm:$0xff] %vm183_vm0, %v2865_v1  ;;  %4163 = vst [vmem:[#allocation22_spill] sm:$0xff] %v2877_v13  ;;  %v2890_v20 = vld [vmem:[#allocation2 + $0x170] sm:$0xff]  ;;  %v2952_v17 = vsel %vm438_vm2, %v494_v21, %v495_v39 }
  0x57   : > { %386 = vst.msk [vmem:[#allocation3 + $0xe0] sm:$0xff] %vm183_vm0, %v2869_v6  ;;  %387 = vst.msk [vmem:[#allocation3 + $0xe8] sm:$0xff] %vm183_vm0, %v2877_v13  ;;  %v515_v32 = vrot.slane %v2890_v20, 1 }
  0x58   : > { %388 = vst.msk [vmem:[#allocation3 + $0xf0] sm:$0xff] %vm183_vm0, %v2881_v14  ;;  %389 = vst.msk [vmem:[#allocation3 + $0xf8] sm:$0xff] %vm183_vm0, %v2890_v20  ;;  %549 = vrot.lane.b32.xlu1 %v2914_v31, %s2467_s29 }
  0x59   : > { %4166 = vst [vmem:[#allocation25_spill] sm:$0xff] %v2907_v25  ;;  %4167 = vst [vmem:[#allocation26_spill] sm:$0xff] %v2914_v31  ;;  %555 = vrot.lane.b32.xlu0 %v2922_v0, %s2467_s29  ;;  %v2934_v25 = vld [vmem:[#allocation2 + $0x100] sm:$0x3]  ;;  %v499_v31 = vrot.slane %v2851_v44, 1 }
  0x5a   : > { %4168 = vst [vmem:[#allocation27_spill] sm:$0xff] %v2922_v0  ;;  %4169 = vst [vmem:[#allocation28_spill] sm:$0xff] %v2929_v43  ;;  %v492_v33 = vrot.slane %v2934_v25, 1  ;;  %v2949_v0 = vld [vmem:[#allocation2 + $0x118] sm:$0x3] }
  0x5b   : > { %4170 = vst [vmem:[#allocation29_spill] sm:$0xff] %v2937_v26  ;;  %4171 = vst [vmem:[#allocation30_spill] sm:$0xff] %v2944_v18  ;;  %v497_v22 = vrot.slane %v2949_v0, 1  ;;  %v2967_v21 = vsel %vm438_vm2, %v499_v31, %v500_v27 }
  0x5c   : > { %553 = vrot.lane.b32.xlu1 %v2929_v43, %s2467_s29  ;;  %4172 = vst [vmem:[#allocation31_spill] sm:$0xff] %v2952_v17  ;;  %v2959_v28 = vsel %vm438_vm2, %v490_v16, %v492_v33  ;;  %4174 = vst [vmem:[#allocation33_spill] sm:$0xff] %v2967_v21  ;;  %v504_v43 = vrot.slane %v2855_v50, 1 }
  0x5d   : > { %559 = vrot.lane.b32.xlu0 %v2937_v26, %s2467_s29  ;;  %4173 = vst [vmem:[#allocation32_spill] sm:$0xff] %v2959_v28  ;;  %v2964_v26 = vld [vmem:[#allocation2 + $0x130] sm:$0x3]  ;;  %v2974_v16 = vsel %vm438_vm2, %v495_v39, %v497_v22 }
  0x5e   : > { %4175 = vst [vmem:[#allocation34_spill] sm:$0xff] %v2974_v16  ;;  %v502_v33 = vrot.slane %v2964_v26, 1  ;;  %v2982_v31 = vsel %vm438_vm2, %v504_v43, %v505_v58 }
  0x5f   : > { %4176 = vst [vmem:[#allocation35_spill] sm:$0xff] %v2982_v31 }
  0x60   : > { %557 = vrot.lane.b32.xlu1 %v2944_v18, %s2467_s29  ;;  %v509_v18 = vrot.slane %v2869_v6, 1  ;;  %v2989_v39 = vsel %vm438_vm2, %v500_v27, %v502_v33 }
  0x61   : > { %563 = vrot.lane.b32.xlu0 %v2952_v17, %s2467_s29  ;;  %v2979_v17 = vld [vmem:[#allocation2 + $0x148] sm:$0x3]  ;;  %4177 = vst [vmem:[#allocation36_spill] sm:$0xff] %v2989_v39 }
  0x62   : > { %v507_v22 = vrot.slane %v2979_v17, 1  ;;  %v2997_v43 = vsel %vm438_vm2, %v509_v18, %v510_v12 }
  0x63   : > { %4178 = vst [vmem:[#allocation37_spill] sm:$0xff] %v2997_v43 }
  0x64   : > { %561 = vrot.lane.b32.xlu1 %v2959_v28, %s2467_s29  ;;  %v514_v28 = vrot.slane %v2881_v14, 1  ;;  %v3004_v27 = vsel %vm438_vm2, %v505_v58, %v507_v22  ;;  %v654_v58 = vrot.slane %v2662_v35, 2  ;;  %v655_v22 = vrot.slane %v2664_v36, 2 }
  0x65   : > { %567 = vrot.lane.b32.xlu0 %v2967_v21, %s2467_s29  ;;  %v2994_v21 = vld [vmem:[#allocation2 + $0x160] sm:$0x3]  ;;  %4179 = vst [vmem:[#allocation38_spill] sm:$0xff] %v3004_v27 }
  0x66   : > { %v512_v33 = vrot.slane %v2994_v21, 1  ;;  %v3012_v18 = vsel %vm438_vm2, %v514_v28, %v515_v32 }
  0x67   : > { %4180 = vst [vmem:[#allocation39_spill] sm:$0xff] %v3012_v18 }
  0x68   : > { %565 = vrot.lane.b32.xlu1 %v2974_v16, %s2467_s29  ;;  %v3017_v16 = vsel %vm438_vm2, %v510_v12, %v512_v33  ;;  %v3032_v12 = vsel %vm648_vm3, %v654_v58, %v655_v22  ;;  %v659_v33 = vrot.slane %v2666_v37, 2 }
  0x69   : > { %571 = vrot.lane.b32.xlu0 %v2982_v31, %s2467_s29  ;;  %v3009_v31 = vld [vmem:[#allocation2 + $0x178] sm:$0x3]  ;;  %4181 = vst [vmem:[#allocation40_spill] sm:$0xff] %v3017_v16 }
  0x6c   : > { %569 = vrot.lane.b32.xlu1 %v2989_v39, %s2467_s29  ;;  %v517_v39 = vrot.slane %v3009_v31, 1 }
  0x6d   : > { %575 = vrot.lane.b32.xlu0 %v2997_v43, %s2467_s29  ;;  %v657_v43 = vrot.slane %v2682_v42, 2 }
  0x6e   : > { %v3027_v28 = vsel %vm438_vm2, %v515_v32, %v517_v39  ;;  %v665_v39 = vrot.slane %v2691_v46, 2 }
  0x6f   : > { %4182 = vst [vmem:[#allocation41_spill] sm:$0xff] %v3027_v28  ;;  %v3049_v58 = vsel %vm648_vm3, %v655_v22, %v657_v43  ;;  %v667_v43 = vrot.slane %v2739_v61, 2  ;;  %v674_v22 = vrot.slane %v2708_v53, 2 }
  0x70   : > { %573 = vrot.lane.b32.xlu1 %v3004_v27, %s2467_s29 }
  0x71   : > { %579 = vrot.lane.b32.xlu0 %v3012_v18, %s2467_s29  ;;  %v660_v18 = vrot.slane %v2677_v40, 2  ;;  %v3075_v27 = vsel %vm648_vm3, %v665_v39, %v667_v43  ;;  %v684_v43 = vrot.slane %v2735_v60, 2 }
  0x73   : > { %v3042_v32 = vsel %vm648_vm3, %v659_v33, %v660_v18  ;;  %v669_v33 = vrot.slane %v2704_v51, 2 }
  0x74   : > { %577 = vrot.lane.b32.xlu1 %v3017_v16, %s2467_s29  ;;  %v670_v16 = vrot.slane %v2706_v52, 2 }
  0x75   : > { %729 = vrot.lane.b32.xlu0 %v2650_v29, %s2468_s30  ;;  %v664_v29 = vrot.slane %v2689_v45, 2 }
  0x77   : > { %v3055_v42 = vsel %vm648_vm3, %v664_v29, %v665_v39  ;;  %v675_v29 = vrot.slane %v2719_v55, 2  ;;  %v677_v39 = vrot.slane %v2816_v24, 2 }
  0x78   : > { %581 = vrot.lane.b32.xlu1 %v3027_v28, %s2467_s29  ;;  %v662_v28 = vrot.slane %v2693_v47, 2  ;;  %v3068_v47 = vsel %vm648_vm3, %v669_v33, %v670_v16  ;;  %v680_v33 = vrot.slane %v2731_v59, 2  ;;  %s3832_s29 = scalar_lea.vmem %s4074_s2, %s2284_s25  ;;  %s2256_s25 = sshll.u32 %s169_s24, 1 }
  0x79   : > { %733 = vrot.lane.b32.xlu0 %v3032_v12, %s2468_s30  ;;  %v3081_v61 = vsel %vm648_vm3, %v674_v22, %v675_v29  ;;  %v685_v22 = vrot.slane %v2743_v62, 2  ;;  %v3101_v59 = vsel %vm648_vm3, %v675_v29, %v677_v39  ;;  %v687_v29 = vrot.slane %v2873_v11, 2 }
  0x7a   : > { %v694_v39 = vrot.slane %v2762_v4, 2 }
  0x7b   : > { %v3107_v24 = vsel %vm648_vm3, %v684_v43, %v685_v22  ;;  %v695_v43 = vrot.slane %v2770_v7, 2 }
  0x7c   : > { %731 = vrot.lane.b32.xlu1 %v2653_v30, %s2468_s30  ;;  %v3062_v30 = vsel %vm648_vm3, %v660_v18, %v662_v28  ;;  %v672_v18 = vrot.slane %v2778_v9, 2  ;;  %v679_v28 = vrot.slane %v2723_v56, 2 }
  0x7d   : > { %737 = vrot.lane.b32.xlu0 %v3042_v32, %s2468_s30  ;;  %v3133_v11 = vsel %vm648_vm3, %v694_v39, %v695_v43  ;;  %v705_v39 = vrot.slane %v2840_v38, 2 }
  0x7e   : > { %v3088_v55 = vsel %vm648_vm3, %v670_v16, %v672_v18  ;;  %v3094_v9 = vsel %vm648_vm3, %v679_v28, %v680_v33  ;;  %v682_v16 = vrot.slane %v2838_v34, 2  ;;  %v689_v18 = vrot.slane %v2754_v2, 2 }
  0x7f   : > { %v690_v28 = vrot.slane %v2758_v3, 2  ;;  %v3127_v3 = vsel %vm648_vm3, %v685_v22, %v687_v29  ;;  %v697_v22 = vrot.slane %v2919_v41, 2  ;;  %v704_v29 = vrot.slane %v2795_v15, 2 }
  0x80   : > { %735 = vrot.lane.b32.xlu1 %v3049_v58, %s2468_s30  ;;  %v3114_v62 = vsel %vm648_vm3, %v680_v33, %v682_v16  ;;  %v692_v33 = vrot.slane %v2904_v23, 2  ;;  %v699_v16 = vrot.slane %v2774_v8, 2 }
  0x81   : > { %741 = vrot.lane.b32.xlu0 %v3055_v42, %s2468_s30  ;;  %v3120_v34 = vsel %vm648_vm3, %v689_v18, %v690_v28  ;;  %v700_v18 = vrot.slane %v2782_v10, 2  ;;  %v3153_v10 = vsel %vm648_vm3, %v695_v43, %v697_v22  ;;  %v3159_v41 = vsel %vm648_vm3, %v704_v29, %v705_v39 }
  0x82   : > { %v3140_v7 = vsel %vm648_vm3, %v690_v28, %v692_v33  ;;  %v702_v28 = vrot.slane %v2934_v25, 2  ;;  %v709_v33 = vrot.slane %v2851_v44, 2  ;;  %v707_v43 = vrot.slane %v2949_v0, 2 }
  0x83   : > { %v3146_v23 = vsel %vm648_vm3, %v699_v16, %v700_v18  ;;  %v710_v16 = vrot.slane %v2853_v49, 2  ;;  %v714_v22 = vrot.slane %v2855_v50, 2  ;;  %v715_v29 = vrot.slane %v2865_v1, 2 }
  0x84   : > { %739 = vrot.lane.b32.xlu1 %v3062_v30, %s2468_s30  ;;  %v3166_v38 = vsel %vm648_vm3, %v700_v18, %v702_v28  ;;  %v3179_v49 = vsel %vm648_vm3, %v705_v39, %v707_v43  ;;  %v712_v18 = vrot.slane %v2964_v26, 2  ;;  %v719_v28 = vrot.slane %v2869_v6, 2 }
  0x85   : > { %745 = vrot.lane.b32.xlu0 %v3068_v47, %s2468_s30  ;;  %v3172_v25 = vsel %vm648_vm3, %v709_v33, %v710_v16  ;;  %v3185_v0 = vsel %vm648_vm3, %v714_v22, %v715_v29  ;;  %v720_v33 = vrot.slane %v2877_v13, 2  ;;  %v717_v26 = vrot.slane %v2979_v17, 2 }
  0x86   : > { %v3193_v39 = vsel %vm648_vm3, %v710_v16, %v712_v18  ;;  %v724_v22 = vrot.slane %v2881_v14, 2  ;;  %v725_v13 = vrot.slane %v2890_v20, 2  ;;  %v722_v17 = vrot.slane %v2994_v21, 2 }
  0x87   : > { %v3199_v43 = vsel %vm648_vm3, %v719_v28, %v720_v33  ;;  %v727_v21 = vrot.slane %v3009_v31, 2 }
  0x88   : > { %743 = vrot.lane.b32.xlu1 %v3075_v27, %s2468_s30  ;;  %v3214_v18 = vsel %vm648_vm3, %v724_v22, %v725_v13 }
  0x89   : > { %749 = vrot.lane.b32.xlu0 %v3081_v61, %s2468_s30  ;;  %v3230_v22 = vsel %vm648_vm3, %v725_v13, %v727_v21 }
  0x8c   : > { %747 = vrot.lane.b32.xlu1 %v3088_v55, %s2468_s30 }
  0x8d   : > { %753 = vrot.lane.b32.xlu0 %v3094_v9, %s2468_s30 }
  0x90   : > { %751 = vrot.lane.b32.xlu1 %v3101_v59, %s2468_s30 }
  0x91   : > { %757 = vrot.lane.b32.xlu0 %v3107_v24, %s2468_s30 }
  0x94   : > { %755 = vrot.lane.b32.xlu1 %v3114_v62, %s2468_s30  ;;  %v520_v1 = vpop.permute.xlu0 %519 }
  0x95   : > { %761 = vrot.lane.b32.xlu0 %v3120_v34, %s2468_s30  ;;  %616 = vst.msk [vmem:[#allocation3] sm:$0xff] %vm615_vm4, %v520_v1  ;;  %v3207_v1 = vsel %vm648_vm3, %v715_v29, %v717_v26 }
  0x98   : > { %759 = vrot.lane.b32.xlu1 %v3127_v3, %s2468_s30 }
  0x99   : > { %765 = vrot.lane.b32.xlu0 %v3133_v11, %s2468_s30 }
  0x9c   : > { %763 = vrot.lane.b32.xlu1 %v3140_v7, %s2468_s30 }
  0x9d   : > { %769 = vrot.lane.b32.xlu0 %v3146_v23, %s2468_s30 }
  0xa0   : > { %767 = vrot.lane.b32.xlu1 %v3153_v10, %s2468_s30 }
  0xa1   : > { %773 = vrot.lane.b32.xlu0 %v3159_v41, %s2468_s30 }
  0xa4   : > { %771 = vrot.lane.b32.xlu1 %v3166_v38, %s2468_s30 }
  0xa5   : > { %777 = vrot.lane.b32.xlu0 %v3172_v25, %s2468_s30  ;;  %v522_v6 = vpop.permute.xlu0 %521 }
  0xa6   : > { %617 = vst.msk [vmem:[#allocation3 + $0x8] sm:$0xff] %vm615_vm4, %v522_v6  ;;  %v3220_v6 = vsel %vm648_vm3, %v720_v33, %v722_v17 }
  0xa8   : > { %775 = vrot.lane.b32.xlu1 %v3179_v49, %s2468_s30 }
  0xa9   : > { %781 = vrot.lane.b32.xlu0 %v3185_v0, %s2468_s30 }
  0xac   : > { %779 = vrot.lane.b32.xlu1 %v3193_v39, %s2468_s30 }
  0xad   : > { %785 = vrot.lane.b32.xlu0 %v3199_v43, %s2468_s30 }
  0xae   : > { %v524_v16 = vpop.permute.xlu1 %523 }
  0xaf   : > { %618 = vst.msk [vmem:[#allocation3 + $0x10] sm:$0xff] %vm615_vm4, %v524_v16  ;;  %v528_v28 = vpop.permute.xlu0 %527 }
  0xb0   : > { %783 = vrot.lane.b32.xlu1 %v3207_v1, %s2468_s30  ;;  %620 = vst.msk [vmem:[#allocation3 + $0x20] sm:$0xff] %vm615_vm4, %v528_v28 }
  0xb1   : > { %789 = vrot.lane.b32.xlu0 %v3214_v18, %s2468_s30 }
  0xb2   : > { %v526_v29 = vpop.permute.xlu1 %525 }
  0xb3   : > { %619 = vst.msk [vmem:[#allocation3 + $0x18] sm:$0xff] %vm615_vm4, %v526_v29  ;;  %v532_v26 = vpop.permute.xlu0 %531 }
  0xb4   : > { %787 = vrot.lane.b32.xlu1 %v3220_v6, %s2468_s30  ;;  %622 = vst.msk [vmem:[#allocation3 + $0x30] sm:$0xff] %vm615_vm4, %v532_v26 }
  0xb5   : > { %860 = vrot.lane.b32.xlu0 %v2662_v35, %s2469_s4 }
  0xb6   : > { %v530_v16 = vpop.permute.xlu1 %529 }
  0xb7   : > { %621 = vst.msk [vmem:[#allocation3 + $0x28] sm:$0xff] %vm615_vm4, %v530_v16  ;;  %v536_v31 = vpop.permute.xlu0 %535 }
  0xb8   : > { %791 = vrot.lane.b32.xlu1 %v3230_v22, %s2468_s30  ;;  %624 = vst.msk [vmem:[#allocation3 + $0x40] sm:$0xff] %vm615_vm4, %v536_v31  ;;  %s2281_s30 = sshll.u32 %s2517_s16, 5  ;;  %s2475_s16 = smov [#allocation4]  }
  0xb9   : > { %864 = vrot.lane.b32.xlu0 %v2666_v37, %s2469_s4  ;;  %s4030_s8 = scalar_lea.hbm %s4075_s3, %s2281_s30  ;;  %s2406_s11 = sshll.u32 %s2475_s16, 4  ;;  %s2407_s11 = int_to_ptr.vmem [resolvable:$false] %s2406_s11 }
  0xba   : > { %v534_v33 = vpop.permute.xlu1 %533  ;;  %s2408_s17 = scalar_lea.vmem %s2407_s11, 64 }
  0xbb   : > { %623 = vst.msk [vmem:[#allocation3 + $0x38] sm:$0xff] %vm615_vm4, %v534_v33  ;;  %v540_v13 = vpop.permute.xlu0 %539 }
  0xbc   : > { %862 = vrot.lane.b32.xlu1 %v2664_v36, %s2469_s4  ;;  %626 = vst.msk [vmem:[#allocation3 + $0x50] sm:$0xff] %vm615_vm4, %v540_v13 }
  0xbd   : > { %868 = vrot.lane.b32.xlu0 %v2689_v45, %s2469_s4 }
  0xbe   : > { %v538_v35 = vpop.permute.xlu1 %537 }
  0xbf   : > { %625 = vst.msk [vmem:[#allocation3 + $0x48] sm:$0xff] %vm615_vm4, %v538_v35  ;;  %v544_v17 = vpop.permute.xlu0 %543 }
  0xc0   : > { %866 = vrot.lane.b32.xlu1 %v2677_v40, %s2469_s4  ;;  %628 = vst.msk [vmem:[#allocation3 + $0x60] sm:$0xff] %vm615_vm4, %v544_v17 }
  0xc1   : > { %872 = vrot.lane.b32.xlu0 %v2704_v51, %s2469_s4 }
  0xc2   : > { %v542_v28 = vpop.permute.xlu1 %541 }
  0xc3   : > { %627 = vst.msk [vmem:[#allocation3 + $0x58] sm:$0xff] %vm615_vm4, %v542_v28  ;;  %v548_v36 = vpop.permute.xlu0 %547  ;;  %v2399_v28 = vld [vmem:[%s4073_s1] sm:$0xff]  }
  0xc4   : > { %870 = vrot.lane.b32.xlu1 %v2691_v46, %s2469_s4  ;;  %630 = vst.msk [vmem:[#allocation3 + $0x70] sm:$0xff] %vm615_vm4, %v548_v36  ;;  %2305 = vmatprep.subr.bf16.mxu0 %v2399_v28 }
  0xc5   : > { %876 = vrot.lane.b32.xlu0 %v2708_v53, %s2469_s4  ;;  %2343 = vmatprep.subr.bf16.mxu1 %v2399_v28 }
  0xc6   : > { %v546_v21 = vpop.permute.xlu1 %545  ;;  %2306 = vmatpush3.bf16.msra.mxu0 %v2399_v28  ;;  %2346 = vmatpush3.bf16.msra.mxu1 %v2399_v28 }
  0xc7   : > { %629 = vst.msk [vmem:[#allocation3 + $0x68] sm:$0xff] %vm615_vm4, %v546_v21  ;;  %v552_v29 = vpop.permute.xlu0 %551 }
  0xc8   : > { %874 = vrot.lane.b32.xlu1 %v2706_v52, %s2469_s4  ;;  %632 = vst.msk [vmem:[#allocation3 + $0x80] sm:$0xff] %vm615_vm4, %v552_v29 }
  0xc9   : > { %997 = vrot.lane.b32.xlu0 %v2726_v57, %s2470_s5 }
  0xca   : > { %v550_v26 = vpop.permute.xlu1 %549 }
  0xcb   : > { %631 = vst.msk [vmem:[#allocation3 + $0x78] sm:$0xff] %vm615_vm4, %v550_v26  ;;  %v556_v16 = vpop.permute.xlu0 %555 }
  0xcc   : > { %995 = vrot.lane.b32.xlu1 %v2696_v48, %s2470_s5  ;;  %634 = vst.msk [vmem:[#allocation3 + $0x90] sm:$0xff] %vm615_vm4, %v556_v16 }
  0xcd   : > { %1001 = vrot.lane.b32.xlu0 %v2765_v5, %s2470_s5 }
  0xce   : > { %v554_v31 = vpop.permute.xlu1 %553 }
  0xcf   : > { %633 = vst.msk [vmem:[#allocation3 + $0x88] sm:$0xff] %vm615_vm4, %v554_v31  ;;  %v560_v33 = vpop.permute.xlu0 %559 }
  0xd0   : > { %999 = vrot.lane.b32.xlu1 %v2713_v54, %s2470_s5  ;;  %636 = vst.msk [vmem:[#allocation3 + $0xa0] sm:$0xff] %vm615_vm4, %v560_v33 }
  0xd1   : > { %1131 = vrot.lane.b32.xlu0 %v3049_v58, %s2471_s6 }
  0xd2   : > { %v558_v57 = vpop.permute.xlu1 %557 }
  0xd3   : > { %635 = vst.msk [vmem:[#allocation3 + $0x98] sm:$0xff] %vm615_vm4, %v558_v57  ;;  %v564_v48 = vpop.permute.xlu0 %563  ;;  %v4183_v57 = vld [vmem:[#allocation15_spill] sm:$0xff] }
  0xd4   : > { %1129 = vrot.lane.b32.xlu1 %v3032_v12, %s2471_s6  ;;  %638 = vst.msk [vmem:[#allocation3 + $0xb0] sm:$0xff] %vm615_vm4, %v564_v48  ;;  %v4184_v48 = vld [vmem:[#allocation13_spill] sm:$0xff] }
  0xd5   : > { %1135 = vrot.lane.b32.xlu0 %v3062_v30, %s2471_s6 }
  0xd6   : > { %v562_v13 = vpop.permute.xlu1 %561 }
  0xd7   : > { %637 = vst.msk [vmem:[#allocation3 + $0xa8] sm:$0xff] %vm615_vm4, %v562_v13  ;;  %v568_v35 = vpop.permute.xlu0 %567 }
  0xd8   : > { %1133 = vrot.lane.b32.xlu1 %v3042_v32, %s2471_s6  ;;  %640 = vst.msk [vmem:[#allocation3 + $0xc0] sm:$0xff] %vm615_vm4, %v568_v35 }
  0xd9   : > { %1262 = vrot.lane.b32.xlu0 %v2677_v40, %s2472_s7 }
  0xda   : > { %v566_v58 = vpop.permute.xlu1 %565 }
  0xdb   : > { %639 = vst.msk [vmem:[#allocation3 + $0xb8] sm:$0xff] %vm615_vm4, %v566_v58  ;;  %v572_v12 = vpop.permute.xlu0 %571 }
  0xdc   : > { %1260 = vrot.lane.b32.xlu1 %v2666_v37, %s2472_s7  ;;  %642 = vst.msk [vmem:[#allocation3 + $0xd0] sm:$0xff] %vm615_vm4, %v572_v12 }
  0xdd   : > { %1266 = vrot.lane.b32.xlu0 %v2691_v46, %s2472_s7  ;;  %v2400_v46 = vld [vmem:[%s4073_s1 + $0x8] sm:$0xff]  }
  0xde   : > { %v570_v17 = vpop.permute.xlu1 %569  ;;  %2307 = vmatprep.subr.bf16.mxu0 %v2400_v46  ;;  %2344 = vmatprep.subr.bf16.mxu1 %v2400_v46 }
  0xdf   : > { %641 = vst.msk [vmem:[#allocation3 + $0xc8] sm:$0xff] %vm615_vm4, %v570_v17  ;;  %v576_v40 = vpop.permute.xlu0 %575  ;;  %2308 = vmatpush3.bf16.msra.mxu0 %v2400_v46  ;;  %2347 = vmatpush3.bf16.msra.mxu1 %v2400_v46  ;;  %v4185_v17 = vld [vmem:[#allocation7_spill] sm:$0xff] }
  0xe0   : > { %1264 = vrot.lane.b32.xlu1 %v2689_v45, %s2472_s7  ;;  %644 = vst.msk [vmem:[#allocation3 + $0xe0] sm:$0xff] %vm615_vm4, %v576_v40 }
  0xe1   : > { %1397 = vrot.lane.b32.xlu0 %v2765_v5, %s2473_s10  ;;  %v2401_v5 = vld [vmem:[%s4073_s1 + $0x10] ss:$0 sps:$4 sm:$0x33]  }
  0xe2   : > { %v574_v37 = vpop.permute.xlu1 %573  ;;  %2349 = vmatprep.subr.msk.bf16.mxu0 %vm1775_vm6, %v2401_v5  ;;  %v1777_v21 = vsel %vm1775_vm6, %v2401_v5, 0  ;;  %2350 = vmatprep.subr.msk.bf16.mxu1 %vm1775_vm6, %v2401_v5 }
  0xe3   : > { %643 = vst.msk [vmem:[#allocation3 + $0xd8] sm:$0xff] %vm615_vm4, %v574_v37  ;;  %v580_v45 = vpop.permute.xlu0 %579  ;;  %2310 = vmatpush3.bf16.msra.mxu0 %v1777_v21  ;;  %2348 = vmatpush3.bf16.msra.mxu1 %v1777_v21  ;;  %v4186_v37 = vld [vmem:[#allocation19_spill] sm:$0xff] }
  0xe4   : > { %1395 = vrot.lane.b32.xlu1 %v2713_v54, %s2473_s10  ;;  %646 = vst.msk [vmem:[#allocation3 + $0xf0] sm:$0xff] %vm615_vm4, %v580_v45 }
  0xe5   : > { %1401 = vrot.lane.b32.xlu0 %v2805_v19, %s2473_s10 }
  0xe6   : > { %v578_v36 = vpop.permute.xlu1 %577 }
  0xe7   : > { %645 = vst.msk [vmem:[#allocation3 + $0xe8] sm:$0xff] %vm615_vm4, %v578_v36  ;;  %v730_v54 = vpop.permute.xlu0 %729 }
  0xe8   : > { %1399 = vrot.lane.b32.xlu1 %v2748_v63, %s2473_s10  ;;  %826 = vst.msk [vmem:[#allocation3] sm:$0xff] %vm825_vm5, %v730_v54 }
  0xe9   : > { %1531 = vrot.lane.b32.xlu0 %v3062_v30, %s2474_s26 }
  0xea   : > { %v582_v29 = vpop.permute.xlu1 %581 }
  0xeb   : > { %647 = vst.msk [vmem:[#allocation3 + $0xf8] sm:$0xff] %vm615_vm4, %v582_v29  ;;  %v734_v26 = vpop.permute.xlu0 %733  ;;  %v4188_v29 = vld [vmem:[#allocation8_spill] sm:$0xff] }
  0xec   : > { %1529 = vrot.lane.b32.xlu1 %v3042_v32, %s2474_s26  ;;  %828 = vst.msk [vmem:[#allocation3 + $0x10] sm:$0xff] %vm825_vm5, %v734_v26 }
  0xed   : > { %1535 = vrot.lane.b32.xlu0 %v3075_v27, %s2474_s26 }
  0xee   : > { %v732_v16 = vpop.permute.xlu1 %731 }
  0xef   : > { %827 = vst.msk [vmem:[#allocation3 + $0x8] sm:$0xff] %vm825_vm5, %v732_v16  ;;  %v738_v30 = vpop.permute.xlu0 %737 }
  0xf0   : > { %1533 = vrot.lane.b32.xlu1 %v3055_v42, %s2474_s26  ;;  %830 = vst.msk [vmem:[#allocation3 + $0x20] sm:$0xff] %vm825_vm5, %v738_v30  ;;  %v4189_v30 = vld [vmem:[#allocation17_spill] sm:$0xff] }
  0xf1   : > { %1005 = vrot.lane.b32.xlu0 %v2805_v19, %s2470_s5 }
  0xf2   : > { %v736_v31 = vpop.permute.xlu1 %735 }
  0xf3   : > { %829 = vst.msk [vmem:[#allocation3 + $0x18] sm:$0xff] %vm825_vm5, %v736_v31  ;;  %v742_v32 = vpop.permute.xlu0 %741 }
  0xf4   : > { %1003 = vrot.lane.b32.xlu1 %v2748_v63, %s2470_s5  ;;  %832 = vst.msk [vmem:[#allocation3 + $0x30] sm:$0xff] %vm825_vm5, %v742_v32 }
  0xf5   : > { %1009 = vrot.lane.b32.xlu0 %v4183_v57, %s2470_s5 }
  0xf6   : > { %v740_v33 = vpop.permute.xlu1 %739 }
  0xf7   : > { %831 = vst.msk [vmem:[#allocation3 + $0x28] sm:$0xff] %vm825_vm5, %v740_v33  ;;  %v746_v13 = vpop.permute.xlu0 %745  ;;  %v4190_v33 = vld [vmem:[#allocation24_spill] sm:$0xff] }
  0xf8   : > { %1007 = vrot.lane.b32.xlu1 %v4184_v48, %s2470_s5  ;;  %834 = vst.msk [vmem:[#allocation3 + $0x40] sm:$0xff] %vm825_vm5, %v746_v13 }
  0xf9   : > { %1139 = vrot.lane.b32.xlu0 %v3075_v27, %s2471_s6 }
  0xfa   : > { %v744_v19 = vpop.permute.xlu1 %743 }
  0xfb   : > { %833 = vst.msk [vmem:[#allocation3 + $0x38] sm:$0xff] %vm825_vm5, %v744_v19  ;;  %v750_v63 = vpop.permute.xlu0 %749 }
  0xfc   : > { %1137 = vrot.lane.b32.xlu1 %v3055_v42, %s2471_s6  ;;  %836 = vst.msk [vmem:[#allocation3 + $0x50] sm:$0xff] %vm825_vm5, %v750_v63 }
  0xfd   : > { %1143 = vrot.lane.b32.xlu0 %v3088_v55, %s2471_s6 }
  0xfe   : > { %v748_v35 = vpop.permute.xlu1 %747 }
  0xff   : > { %835 = vst.msk [vmem:[#allocation3 + $0x48] sm:$0xff] %vm825_vm5, %v748_v35  ;;  %v754_v58 = vpop.permute.xlu0 %753  ;;  %v4191_v35 = vld [vmem:[#allocation9_spill] sm:$0xff] }
 0x100   : > { %1141 = vrot.lane.b32.xlu1 %v3068_v47, %s2471_s6  ;;  %838 = vst.msk [vmem:[#allocation3 + $0x60] sm:$0xff] %vm825_vm5, %v754_v58 }
 0x101   : > { %1270 = vrot.lane.b32.xlu0 %v2706_v52, %s2472_s7 }
 0x102   : > { %v752_v27 = vpop.permute.xlu1 %751 }
 0x103   : > { %837 = vst.msk [vmem:[#allocation3 + $0x58] sm:$0xff] %vm825_vm5, %v752_v27  ;;  %v758_v42 = vpop.permute.xlu0 %757 }
 0x104   : > { %1268 = vrot.lane.b32.xlu1 %v2704_v51, %s2472_s7  ;;  %840 = vst.msk [vmem:[#allocation3 + $0x70] sm:$0xff] %vm825_vm5, %v758_v42  ;;  %v4192_v42 = vld [vmem:[#allocation23_spill] sm:$0xff] }
 0x105   : > { %1274 = vrot.lane.b32.xlu0 %v4185_v17, %s2472_s7 }
 0x106   : > { %v756_v12 = vpop.permute.xlu1 %755 }
 0x107   : > { %839 = vst.msk [vmem:[#allocation3 + $0x68] sm:$0xff] %vm825_vm5, %v756_v12  ;;  %v762_v28 = vpop.permute.xlu0 %761 }
 0x108   : > { %1272 = vrot.lane.b32.xlu1 %v2708_v53, %s2472_s7  ;;  %842 = vst.msk [vmem:[#allocation3 + $0x80] sm:$0xff] %vm825_vm5, %v762_v28  ;;  %v4187_v53 = vld [vmem:[#allocation14_spill] sm:$0xff] }
 0x109   : > { %1405 = vrot.lane.b32.xlu0 %v4183_v57, %s2473_s10  ;;  %v4193_v28 = vld [vmem:[#allocation26_spill] sm:$0xff] }
 0x10a   : > { %v760_v52 = vpop.permute.xlu1 %759 }
 0x10b   : > { %841 = vst.msk [vmem:[#allocation3 + $0x78] sm:$0xff] %vm825_vm5, %v760_v52  ;;  %v766_v51 = vpop.permute.xlu0 %765 }
 0x10c   : > { %1403 = vrot.lane.b32.xlu1 %v4184_v48, %s2473_s10  ;;  %844 = vst.msk [vmem:[#allocation3 + $0x90] sm:$0xff] %vm825_vm5, %v766_v51 }
 0x10d   : > { %1409 = vrot.lane.b32.xlu0 %v4186_v37, %s2473_s10 }
 0x10e   : > { %v764_v40 = vpop.permute.xlu1 %763 }
 0x10f   : > { %843 = vst.msk [vmem:[#allocation3 + $0x88] sm:$0xff] %vm825_vm5, %v764_v40  ;;  %v770_v46 = vpop.permute.xlu0 %769 }
 0x110   : > { %1407 = vrot.lane.b32.xlu1 %v4187_v53, %s2473_s10  ;;  %846 = vst.msk [vmem:[#allocation3 + $0xa0] sm:$0xff] %vm825_vm5, %v770_v46  ;;  %v4194_v46 = vld [vmem:[#allocation10_spill] sm:$0xff] }
 0x111   : > { %1539 = vrot.lane.b32.xlu0 %v3088_v55, %s2474_s26 }
 0x112   : > { %v768_v45 = vpop.permute.xlu1 %767 }
 0x113   : > { %845 = vst.msk [vmem:[#allocation3 + $0x98] sm:$0xff] %vm825_vm5, %v768_v45  ;;  %v774_v36 = vpop.permute.xlu0 %773 }
 0x114   : > { %1537 = vrot.lane.b32.xlu1 %v3068_v47, %s2474_s26  ;;  %848 = vst.msk [vmem:[#allocation3 + $0xb0] sm:$0xff] %vm825_vm5, %v774_v36 }
 0x115   : > { %1543 = vrot.lane.b32.xlu0 %v3101_v59, %s2474_s26 }
 0x116   : > { %v772_v5 = vpop.permute.xlu1 %771 }
 0x117   : > { %847 = vst.msk [vmem:[#allocation3 + $0xa8] sm:$0xff] %vm825_vm5, %v772_v5  ;;  %v778_v54 = vpop.permute.xlu0 %777  ;;  %v4195_v5 = vld [vmem:[#allocation25_spill] sm:$0xff] }
 0x118   : > { %1541 = vrot.lane.b32.xlu1 %v3081_v61, %s2474_s26  ;;  %850 = vst.msk [vmem:[#allocation3 + $0xc0] sm:$0xff] %vm825_vm5, %v778_v54 }
 0x119   : > { %880 = vrot.lane.b32.xlu0 %v2723_v56, %s2469_s4 }
 0x11a   : > { %v776_v55 = vpop.permute.xlu1 %775 }
 0x11b   : > { %849 = vst.msk [vmem:[#allocation3 + $0xb8] sm:$0xff] %vm825_vm5, %v776_v55  ;;  %v782_v47 = vpop.permute.xlu0 %781 }
 0x11c   : > { %878 = vrot.lane.b32.xlu1 %v4185_v17, %s2469_s4  ;;  %852 = vst.msk [vmem:[#allocation3 + $0xd0] sm:$0xff] %vm825_vm5, %v782_v47  ;;  %v4196_v47 = vld [vmem:[#allocation28_spill] sm:$0xff] }
 0x11d   : > { %1011 = vrot.lane.b32.xlu0 %v4187_v53, %s2470_s5 }
 0x11e   : > { %v780_v21 = vpop.permute.xlu1 %779 }
 0x11f   : > { %851 = vst.msk [vmem:[#allocation3 + $0xc8] sm:$0xff] %vm825_vm5, %v780_v21  ;;  %v786_v26 = vpop.permute.xlu0 %785 }
 0x120   : > { %882 = vrot.lane.b32.xlu1 %v4188_v29, %s2469_s4  ;;  %854 = vst.msk [vmem:[#allocation3 + $0xe0] sm:$0xff] %vm825_vm5, %v786_v26 }
 0x121   : > { %1015 = vrot.lane.b32.xlu0 %v4189_v30, %s2470_s5 }
 0x122   : > { %v784_v16 = vpop.permute.xlu1 %783 }
 0x123   : > { %853 = vst.msk [vmem:[#allocation3 + $0xd8] sm:$0xff] %vm825_vm5, %v784_v16  ;;  %v790_v31 = vpop.permute.xlu0 %789 }
 0x124   : > { %1013 = vrot.lane.b32.xlu1 %v4186_v37, %s2470_s5  ;;  %856 = vst.msk [vmem:[#allocation3 + $0xf0] sm:$0xff] %vm825_vm5, %v790_v31 }
 0x125   : > { %1145 = vrot.lane.b32.xlu0 %v3081_v61, %s2471_s6 }
 0x126   : > { %v788_v32 = vpop.permute.xlu1 %787 }
 0x127   : > { %855 = vst.msk [vmem:[#allocation3 + $0xe8] sm:$0xff] %vm825_vm5, %v788_v32  ;;  %v861_v57 = vpop.permute.xlu0 %860 }
 0x128   : > { %1017 = vrot.lane.b32.xlu1 %v4190_v33, %s2470_s5  ;;  %957 = vst.msk [vmem:[#allocation3] sm:$0xff] %vm956_vm7, %v861_v57  ;;  %v4197_v57 = vld [vmem:[#allocation11_spill] sm:$0xff] }
 0x129   : > { %1149 = vrot.lane.b32.xlu0 %v3094_v9, %s2471_s6 }
 0x12a   : > { %v792_v48 = vpop.permute.xlu1 %791 }
 0x12b   : > { %857 = vst.msk [vmem:[#allocation3 + $0xf8] sm:$0xff] %vm825_vm5, %v792_v48  ;;  %v865_v13 = vpop.permute.xlu0 %864 }
 0x12c   : > { %1147 = vrot.lane.b32.xlu1 %v3101_v59, %s2471_s6  ;;  %959 = vst.msk [vmem:[#allocation3 + $0x10] sm:$0xff] %vm956_vm7, %v865_v13 }
 0x12d   : > { %1276 = vrot.lane.b32.xlu0 %v2723_v56, %s2472_s7 }
 0x12e   : > { %v863_v61 = vpop.permute.xlu1 %862 }
 0x12f   : > { %958 = vst.msk [vmem:[#allocation3 + $0x8] sm:$0xff] %vm956_vm7, %v863_v61  ;;  %v869_v19 = vpop.permute.xlu0 %868 }
 0x130   : > { %1151 = vrot.lane.b32.xlu1 %v3114_v62, %s2471_s6  ;;  %961 = vst.msk [vmem:[#allocation3 + $0x20] sm:$0xff] %vm956_vm7, %v869_v19 }
 0x131   : > { %1280 = vrot.lane.b32.xlu0 %v2735_v60, %s2472_s7 }
 0x132   : > { %v867_v63 = vpop.permute.xlu1 %866 }
 0x133   : > { %960 = vst.msk [vmem:[#allocation3 + $0x18] sm:$0xff] %vm956_vm7, %v867_v63  ;;  %v873_v59 = vpop.permute.xlu0 %872  ;;  %v4198_v63 = vld [vmem:[#allocation27_spill] sm:$0xff] }
 0x134   : > { %1278 = vrot.lane.b32.xlu1 %v4188_v29, %s2472_s7  ;;  %963 = vst.msk [vmem:[#allocation3 + $0x30] sm:$0xff] %vm956_vm7, %v873_v59 }
 0x135   : > { %1411 = vrot.lane.b32.xlu0 %v4189_v30, %s2473_s10 }
 0x136   : > { %v871_v56 = vpop.permute.xlu1 %870 }
 0x137   : > { %962 = vst.msk [vmem:[#allocation3 + $0x28] sm:$0xff] %vm956_vm7, %v871_v56  ;;  %v877_v58 = vpop.permute.xlu0 %876 }
 0x138   : > { %1282 = vrot.lane.b32.xlu1 %v4191_v35, %s2472_s7  ;;  %965 = vst.msk [vmem:[#allocation3 + $0x40] sm:$0xff] %vm956_vm7, %v877_v58  ;;  %v4199_v58 = vld [vmem:[#allocation30_spill] sm:$0xff] }
 0x139   : > { %1415 = vrot.lane.b32.xlu0 %v4192_v42, %s2473_s10 }
 0x13a   : > { %v875_v27 = vpop.permute.xlu1 %874 }
 0x13b   : > { %964 = vst.msk [vmem:[#allocation3 + $0x38] sm:$0xff] %vm956_vm7, %v875_v27  ;;  %v998_v12 = vpop.permute.xlu0 %997 }
 0x13c   : > { %1413 = vrot.lane.b32.xlu1 %v4190_v33, %s2473_s10  ;;  %1093 = vst.msk [vmem:[#allocation3 + $0x8] sm:$0xff] %vm1091_vm8, %v998_v12 }
 0x13d   : > { %1545 = vrot.lane.b32.xlu0 %v3094_v9, %s2474_s26 }
 0x13e   : > { %v996_v17 = vpop.permute.xlu1 %995 }
 0x13f   : > { %1092 = vst.msk [vmem:[#allocation3] sm:$0xff] %vm1091_vm8, %v996_v17  ;;  %v1002_v52 = vpop.permute.xlu0 %1001 }
 0x140   : > { %1417 = vrot.lane.b32.xlu1 %v4193_v28, %s2473_s10  ;;  %1095 = vst.msk [vmem:[#allocation3 + $0x18] sm:$0xff] %vm1091_vm8, %v1002_v52  ;;  %v4200_v52 = vld [vmem:[#allocation12_spill] sm:$0xff] }
 0x141   : > { %1549 = vrot.lane.b32.xlu0 %v3107_v24, %s2474_s26 }
 0x142   : > { %v1000_v51 = vpop.permute.xlu1 %999 }
 0x143   : > { %1094 = vst.msk [vmem:[#allocation3 + $0x10] sm:$0xff] %vm1091_vm8, %v1000_v51  ;;  %v1132_v40 = vpop.permute.xlu0 %1131 }
 0x144   : > { %1547 = vrot.lane.b32.xlu1 %v3114_v62, %s2474_s26  ;;  %1227 = vst.msk [vmem:[#allocation3 + $0x8] sm:$0xff] %vm1225_vm9, %v1132_v40 }
 0x145   : > { %884 = vrot.lane.b32.xlu0 %v2735_v60, %s2469_s4 }
 0x146   : > { %v1130_v9 = vpop.permute.xlu1 %1129 }
 0x147   : > { %1226 = vst.msk [vmem:[#allocation3] sm:$0xff] %vm1225_vm9, %v1130_v9  ;;  %v1136_v37 = vpop.permute.xlu0 %1135  ;;  %v4201_v9 = vld [vmem:[#allocation29_spill] sm:$0xff] }
 0x148   : > { %1551 = vrot.lane.b32.xlu1 %v3127_v3, %s2474_s26  ;;  %1229 = vst.msk [vmem:[#allocation3 + $0x18] sm:$0xff] %vm1225_vm9, %v1136_v37 }
 0x149   : > { %888 = vrot.lane.b32.xlu0 %v2754_v2, %s2469_s4 }
 0x14a   : > { %v1134_v53 = vpop.permute.xlu1 %1133 }
 0x14b   : > { %1228 = vst.msk [vmem:[#allocation3 + $0x10] sm:$0xff] %vm1225_vm9, %v1134_v53  ;;  %v1263_v62 = vpop.permute.xlu0 %1262 }
 0x14c   : > { %886 = vrot.lane.b32.xlu1 %v4191_v35, %s2469_s4  ;;  %1358 = vst.msk [vmem:[#allocation3 + $0x8] sm:$0xff] %vm1356_vm10, %v1263_v62  ;;  %v269_v62 = vld [vmem:[%s2610_s28 + $0xf0] sm:$0xff] }
 0x14d   : > { %1019 = vrot.lane.b32.xlu0 %v4192_v42, %s2470_s5  ;;  %302 = vst.msk [vmem:[#allocation2 + $0x181] sm:$0xff] %vm183_vm0, %v269_v62  ;;  %v4209_v62 = vld [vmem:[#allocation20_spill] sm:$0xff] }
 0x14e   : > { %v1261_v60 = vpop.permute.xlu1 %1260 }
 0x14f   : > { %1357 = vst.msk [vmem:[#allocation3] sm:$0xff] %vm1356_vm10, %v1261_v60  ;;  %v1267_v45 = vpop.permute.xlu0 %1266  ;;  %v270_v60 = vld [vmem:[%s2610_s28 + $0xf8] sm:$0xff] }
 0x150   : > { %890 = vrot.lane.b32.xlu1 %v4194_v46, %s2469_s4  ;;  %1360 = vst.msk [vmem:[#allocation3 + $0x18] sm:$0xff] %vm1356_vm10, %v1267_v45 }
 0x151   : > { %1023 = vrot.lane.b32.xlu0 %v4195_v5, %s2470_s5  ;;  %303 = vst.msk [vmem:[#allocation2 + $0x189] sm:$0xff] %vm183_vm0, %v270_v60 }
 0x152   : > { %v1265_v36 = vpop.permute.xlu1 %1264 }
 0x153   : > { %1359 = vst.msk [vmem:[#allocation3 + $0x10] sm:$0xff] %vm1356_vm10, %v1265_v36  ;;  %v1398_v54 = vpop.permute.xlu0 %1397 }
 0x154   : > { %1021 = vrot.lane.b32.xlu1 %v4193_v28, %s2470_s5  ;;  %1493 = vst.msk [vmem:[#allocation3 + $0x8] sm:$0xff] %vm1491_vm11, %v1398_v54 }
 0x155   : > { %1153 = vrot.lane.b32.xlu0 %v3107_v24, %s2471_s6 }
 0x156   : > { %v1396_v55 = vpop.permute.xlu1 %1395 }
 0x157   : > { %1492 = vst.msk [vmem:[#allocation3] sm:$0xff] %vm1491_vm11, %v1396_v55  ;;  %v1402_v21 = vpop.permute.xlu0 %1401 }
 0x158   : > { %1025 = vrot.lane.b32.xlu1 %v4196_v47, %s2470_s5  ;;  %1495 = vst.msk [vmem:[#allocation3 + $0x18] sm:$0xff] %vm1491_vm11, %v1402_v21 }
 0x159   : > { %1157 = vrot.lane.b32.xlu0 %v3120_v34, %s2471_s6 }
 0x15a   : > { %v1400_v29 = vpop.permute.xlu1 %1399 }
 0x15b   : > { %1494 = vst.msk [vmem:[#allocation3 + $0x10] sm:$0xff] %vm1491_vm11, %v1400_v29  ;;  %v1532_v26 = vpop.permute.xlu0 %1531 }
 0x15c   : > { %1155 = vrot.lane.b32.xlu1 %v3127_v3, %s2471_s6  ;;  %1627 = vst.msk [vmem:[#allocation3 + $0x8] sm:$0xff] %vm1625_vm12, %v1532_v26 }
 0x15d   : > { %1284 = vrot.lane.b32.xlu0 %v2754_v2, %s2472_s7 }
 0x15e   : > { %v1530_v24 = vpop.permute.xlu1 %1529 }
 0x15f   : > { %1626 = vst.msk [vmem:[#allocation3] sm:$0xff] %vm1625_vm12, %v1530_v24  ;;  %v1536_v16 = vpop.permute.xlu0 %1535 }
 0x160   : > { %1159 = vrot.lane.b32.xlu1 %v3140_v7, %s2471_s6  ;;  %1629 = vst.msk [vmem:[#allocation3 + $0x18] sm:$0xff] %vm1625_vm12, %v1536_v16 }
 0x161   : > { %1288 = vrot.lane.b32.xlu0 %v2762_v4, %s2472_s7 }
 0x162   : > { %v1534_v30 = vpop.permute.xlu1 %1533 }
 0x163   : > { %1628 = vst.msk [vmem:[#allocation3 + $0x10] sm:$0xff] %vm1625_vm12, %v1534_v30  ;;  %v1006_v3 = vpop.permute.xlu0 %1005  ;;  %v1659_v31 = vld [vmem:[#allocation3 + $0x8] sm:$0xff] }
 0x164   : > { %1286 = vrot.lane.b32.xlu1 %v4194_v46, %s2472_s7  ;;  %1097 = vst.msk [vmem:[#allocation3 + $0x28] sm:$0xff] %vm1091_vm8, %v1006_v3  ;;  %v4202_v46 = vld [vmem:[#allocation32_spill] sm:$0xff] }
 0x165   : > { %1419 = vrot.lane.b32.xlu0 %v4195_v5, %s2473_s10  ;;  %v4203_v30 = vld [vmem:[#allocation16_spill] sm:$0xff] }
 0x166   : > { %v1004_v2 = vpop.permute.xlu1 %1003  ;;  %v1658_v32 = vld [vmem:[#allocation3] sm:$0xff] }
 0x167   : > { %1096 = vst.msk [vmem:[#allocation3 + $0x20] sm:$0xff] %vm1091_vm8, %v1004_v2  ;;  %v1690_v33 = vpack.c.bf16 %v1659_v31, %v1658_v32  ;;  %v1010_v48 = vpop.permute.xlu0 %1009  ;;  %v1661_v13 = vld [vmem:[#allocation3 + $0x18] sm:$0xff]  ;;  %v4204_v2 = vld [vmem:[#allocation31_spill] sm:$0xff] }
 0x168   : > { %1290 = vrot.lane.b32.xlu1 %v4197_v57, %s2472_s7  ;;  %1099 = vst.msk [vmem:[#allocation3 + $0x38] sm:$0xff] %vm1091_vm8, %v1010_v48 }
 0x169   : > { %2311 = vmatprep.mubr.msk.bf16.mxu0 %vm1726_vm13, %v1690_v33  ;;  %1423 = vrot.lane.b32.xlu0 %v4198_v63, %s2473_s10 }
 0x16a   : > { %v1008_v61 = vpop.permute.xlu1 %1007  ;;  %v1660_v19 = vld [vmem:[#allocation3 + $0x10] sm:$0xff] }
 0x16b   : > { %1098 = vst.msk [vmem:[#allocation3 + $0x30] sm:$0xff] %vm1091_vm8, %v1008_v61  ;;  %v1691_v59 = vpack.c.bf16 %v1661_v13, %v1660_v19  ;;  %v1140_v56 = vpop.permute.xlu0 %1139 }
 0x16c   : > { %1421 = vrot.lane.b32.xlu1 %v4196_v47, %s2473_s10  ;;  %1231 = vst.msk [vmem:[#allocation3 + $0x28] sm:$0xff] %vm1225_vm9, %v1140_v56 }
 0x16d   : > { %2312 = vmatmul.mubr.msk.bf16.vlgmr.msra.gmra.mrb[0].mxu0 %vm1726_vm13, %v1691_v59  ;;  %1553 = vrot.lane.b32.xlu0 %v3120_v34, %s2474_s26  ;;  %v4206_v59 = vld [vmem:[#allocation18_spill] sm:$0xff] }
 0x16e   : > { %v1138_v35 = vpop.permute.xlu1 %1137 }
 0x16f   : > { %1230 = vst.msk [vmem:[#allocation3 + $0x20] sm:$0xff] %vm1225_vm9, %v1138_v35  ;;  %v1144_v27 = vpop.permute.xlu0 %1143 }
 0x170   : > { %1425 = vrot.lane.b32.xlu1 %v4199_v58, %s2473_s10  ;;  %1233 = vst.msk [vmem:[#allocation3 + $0x38] sm:$0xff] %vm1225_vm9, %v1144_v27 }
 0x171   : > { %1557 = vrot.lane.b32.xlu0 %v3133_v11, %s2474_s26 }
 0x172   : > { %v1142_v42 = vpop.permute.xlu1 %1141 }
 0x173   : > { %1232 = vst.msk [vmem:[#allocation3 + $0x30] sm:$0xff] %vm1225_vm9, %v1142_v42  ;;  %v1271_v12 = vpop.permute.xlu0 %1270 }
 0x174   : > { %1555 = vrot.lane.b32.xlu1 %v3140_v7, %s2474_s26  ;;  %1362 = vst.msk [vmem:[#allocation3 + $0x28] sm:$0xff] %vm1356_vm10, %v1271_v12  ;;  %v4208_v12 = vld [vmem:[#allocation36_spill] sm:$0xff] }
 0x175   : > { %892 = vrot.lane.b32.xlu0 %v2762_v4, %s2469_s4 }
 0x176   : > { %v1269_v34 = vpop.permute.xlu1 %1268 }
 0x177   : > { %1361 = vst.msk [vmem:[#allocation3 + $0x20] sm:$0xff] %vm1356_vm10, %v1269_v34  ;;  %v1275_v17 = vpop.permute.xlu0 %1274 }
 0x178   : > { %1559 = vrot.lane.b32.xlu1 %v3153_v10, %s2474_s26  ;;  %1364 = vst.msk [vmem:[#allocation3 + $0x38] sm:$0xff] %vm1356_vm10, %v1275_v17 }
 0x179   : > { %896 = vrot.lane.b32.xlu0 %v2774_v8, %s2469_s4 }
 0x17a   : > { %v1273_v28 = vpop.permute.xlu1 %1272 }
 0x17b   : > { %1363 = vst.msk [vmem:[#allocation3 + $0x30] sm:$0xff] %vm1356_vm10, %v1273_v28  ;;  %v1406_v7 = vpop.permute.xlu0 %1405 }
 0x17c   : > { %894 = vrot.lane.b32.xlu1 %v4197_v57, %s2469_s4  ;;  %1497 = vst.msk [vmem:[#allocation3 + $0x28] sm:$0xff] %vm1491_vm11, %v1406_v7  ;;  %v4205_v57 = vld [vmem:[#allocation34_spill] sm:$0xff] }
 0x17d   : > { %1027 = vrot.lane.b32.xlu0 %v4198_v63, %s2470_s5 }
 0x17e   : > { %v1404_v4 = vpop.permute.xlu1 %1403 }
 0x17f   : > { %1496 = vst.msk [vmem:[#allocation3 + $0x20] sm:$0xff] %vm1491_vm11, %v1404_v4  ;;  %v1410_v51 = vpop.permute.xlu0 %1409 }
 0x180   : > { %898 = vrot.lane.b32.xlu1 %v4200_v52, %s2469_s4  ;;  %1499 = vst.msk [vmem:[#allocation3 + $0x38] sm:$0xff] %vm1491_vm11, %v1410_v51 }
 0x181   : > { %1031 = vrot.lane.b32.xlu0 %v4201_v9, %s2470_s5 }
 0x182   : > { %v1408_v40 = vpop.permute.xlu1 %1407 }
 0x183   : > { %1498 = vst.msk [vmem:[#allocation3 + $0x30] sm:$0xff] %vm1491_vm11, %v1408_v40  ;;  %v1540_v37 = vpop.permute.xlu0 %1539 }
 0x184   : > { %1029 = vrot.lane.b32.xlu1 %v4199_v58, %s2470_s5  ;;  %1631 = vst.msk [vmem:[#allocation3 + $0x28] sm:$0xff] %vm1625_vm12, %v1540_v37  ;;  %v4207_v58 = vld [vmem:[#allocation33_spill] sm:$0xff] }
 0x185   : > { %1161 = vrot.lane.b32.xlu0 %v3133_v11, %s2471_s6 }
 0x186   : > { %v1538_v53 = vpop.permute.xlu1 %1537 }
 0x187   : > { %1630 = vst.msk [vmem:[#allocation3 + $0x20] sm:$0xff] %vm1625_vm12, %v1538_v53  ;;  %v1544_v45 = vpop.permute.xlu0 %1543 }
 0x188   : > { %1033 = vrot.lane.b32.xlu1 %v4202_v46, %s2470_s5  ;;  %1633 = vst.msk [vmem:[#allocation3 + $0x38] sm:$0xff] %vm1625_vm12, %v1544_v45  ;;  %v4210_v45 = vld [vmem:[#allocation35_spill] sm:$0xff] }
 0x189   : > { %1165 = vrot.lane.b32.xlu0 %v3146_v23, %s2471_s6 }
 0x18a   : > { %v1542_v36 = vpop.permute.xlu1 %1541 }
 0x18b   : > { %1632 = vst.msk [vmem:[#allocation3 + $0x30] sm:$0xff] %vm1625_vm12, %v1542_v36  ;;  %v1663_v11 = vld [vmem:[#allocation3 + $0x28] sm:$0xff]  ;;  %v881_v5 = vpop.permute.xlu0 %880 }
 0x18c   : > { %1163 = vrot.lane.b32.xlu1 %v3153_v10, %s2471_s6  ;;  %967 = vst.msk [vmem:[#allocation3 + $0x50] sm:$0xff] %vm956_vm7, %v881_v5  ;;  %v4211_v5 = vld [vmem:[#allocation38_spill] sm:$0xff] }
 0x18d   : > { %1292 = vrot.lane.b32.xlu0 %v2774_v8, %s2472_s7 }
 0x18e   : > { %v879_v54 = vpop.permute.xlu1 %878  ;;  %v1662_v55 = vld [vmem:[#allocation3 + $0x20] sm:$0xff] }
 0x18f   : > { %966 = vst.msk [vmem:[#allocation3 + $0x48] sm:$0xff] %vm956_vm7, %v879_v54  ;;  %v1692_v47 = vpack.c.bf16 %v1663_v11, %v1662_v55  ;;  %v1665_v21 = vld [vmem:[#allocation3 + $0x38] sm:$0xff]  ;;  %v1012_v29 = vpop.permute.xlu0 %1011 }
 0x190   : > { %1167 = vrot.lane.b32.xlu1 %v3166_v38, %s2471_s6  ;;  %1100 = vst.msk [vmem:[#allocation3 + $0x40] sm:$0xff] %vm1091_vm8, %v1012_v29 }
 0x191   : > { %2315 = vmatprep.mubr.msk.bf16.mxu0 %vm1726_vm13, %v1692_v47  ;;  %1296 = vrot.lane.b32.xlu0 %v2795_v15, %s2472_s7 }
 0x192   : > { %v883_v10 = vpop.permute.xlu1 %882  ;;  %v1664_v26 = vld [vmem:[#allocation3 + $0x30] sm:$0xff] }
 0x193   : > { %968 = vst.msk [vmem:[#allocation3 + $0x58] sm:$0xff] %vm956_vm7, %v883_v10  ;;  %v1693_v8 = vpack.c.bf16 %v1665_v21, %v1664_v26  ;;  %v1016_v24 = vpop.permute.xlu0 %1015  ;;  %v4212_v10 = vld [vmem:[#allocation21_spill] sm:$0xff]  ;;  %v4213_v26 = vld [vmem:[#allocation22_spill] sm:$0xff] }
 0x194   : > { %1294 = vrot.lane.b32.xlu1 %v4200_v52, %s2472_s7  ;;  %1102 = vst.msk [vmem:[#allocation3 + $0x50] sm:$0xff] %vm1091_vm8, %v1016_v24 }
 0x195   : > { %2316 = vmatmul.mubr.msk.bf16.gmra.mrb[4].mxu0 %vm1726_vm13, %v1693_v8  ;;  %1427 = vrot.lane.b32.xlu0 %v4201_v9, %s2473_s10 }
 0x196   : > { %v1014_v16 = vpop.permute.xlu1 %1013 }
 0x197   : > { %1101 = vst.msk [vmem:[#allocation3 + $0x48] sm:$0xff] %vm1091_vm8, %v1014_v16  ;;  %v1146_v3 = vpop.permute.xlu0 %1145  ;;  %v4214_v16 = vld [vmem:[#allocation37_spill] sm:$0xff] }
 0x198   : > { %1298 = vrot.lane.b32.xlu1 %v4203_v30, %s2472_s7  ;;  %1234 = vst.msk [vmem:[#allocation3 + $0x40] sm:$0xff] %vm1225_vm9, %v1146_v3 }
 0x199   : > { %1431 = vrot.lane.b32.xlu0 %v4204_v2, %s2473_s10 }
 0x19a   : > { %v1018_v31 = vpop.permute.xlu1 %1017 }
 0x19b   : > { %1103 = vst.msk [vmem:[#allocation3 + $0x58] sm:$0xff] %vm1091_vm8, %v1018_v31  ;;  %v1150_v32 = vpop.permute.xlu0 %1149  ;;  %v4215_v31 = vld [vmem:[#allocation40_spill] sm:$0xff] }
 0x19c   : > { %1429 = vrot.lane.b32.xlu1 %v4202_v46, %s2473_s10  ;;  %1236 = vst.msk [vmem:[#allocation3 + $0x50] sm:$0xff] %vm1225_vm9, %v1150_v32 }
 0x19d   : > { %1561 = vrot.lane.b32.xlu0 %v3146_v23, %s2474_s26 }
 0x19e   : > { %v1148_v33 = vpop.permute.xlu1 %1147 }
 0x19f   : > { %1235 = vst.msk [vmem:[#allocation3 + $0x48] sm:$0xff] %vm1225_vm9, %v1148_v33  ;;  %v1277_v48 = vpop.permute.xlu0 %1276 }
 0x1a0   : > { %1433 = vrot.lane.b32.xlu1 %v4205_v57, %s2473_s10  ;;  %1365 = vst.msk [vmem:[#allocation3 + $0x40] sm:$0xff] %vm1356_vm10, %v1277_v48 }
 0x1a1   : > { %1565 = vrot.lane.b32.xlu0 %v3159_v41, %s2474_s26 }
 0x1a2   : > { %v1152_v13 = vpop.permute.xlu1 %1151 }
 0x1a3   : > { %1237 = vst.msk [vmem:[#allocation3 + $0x58] sm:$0xff] %vm1225_vm9, %v1152_v13  ;;  %v1281_v61 = vpop.permute.xlu0 %1280 }
 0x1a4   : > { %1563 = vrot.lane.b32.xlu1 %v3166_v38, %s2474_s26  ;;  %1367 = vst.msk [vmem:[#allocation3 + $0x50] sm:$0xff] %vm1356_vm10, %v1281_v61 }
 0x1a5   : > { %900 = vrot.lane.b32.xlu0 %v2795_v15, %s2469_s4 }
 0x1a6   : > { %v1279_v23 = vpop.permute.xlu1 %1278 }
 0x1a7   : > { %1366 = vst.msk [vmem:[#allocation3 + $0x48] sm:$0xff] %vm1356_vm10, %v1279_v23  ;;  %v1412_v19 = vpop.permute.xlu0 %1411 }
 0x1a8   : > { %1567 = vrot.lane.b32.xlu1 %v3179_v49, %s2474_s26  ;;  %1500 = vst.msk [vmem:[#allocation3 + $0x40] sm:$0xff] %vm1491_vm11, %v1412_v19 }
 0x1a9   : > { %904 = vrot.lane.b32.xlu0 %v2851_v44, %s2469_s4 }
 0x1aa   : > { %v1283_v63 = vpop.permute.xlu1 %1282 }
 0x1ab   : > { %1368 = vst.msk [vmem:[#allocation3 + $0x58] sm:$0xff] %vm1356_vm10, %v1283_v63  ;;  %v1416_v38 = vpop.permute.xlu0 %1415 }
 0x1ac   : > { %902 = vrot.lane.b32.xlu1 %v4203_v30, %s2469_s4  ;;  %1502 = vst.msk [vmem:[#allocation3 + $0x50] sm:$0xff] %vm1491_vm11, %v1416_v38 }
 0x1ad   : > { %1035 = vrot.lane.b32.xlu0 %v4204_v2, %s2470_s5 }
 0x1ae   : > { %v1414_v15 = vpop.permute.xlu1 %1413 }
 0x1af   : > { %1501 = vst.msk [vmem:[#allocation3 + $0x48] sm:$0xff] %vm1491_vm11, %v1414_v15  ;;  %v1546_v56 = vpop.permute.xlu0 %1545 }
 0x1b0   : > { %906 = vrot.lane.b32.xlu1 %v4206_v59, %s2469_s4  ;;  %1634 = vst.msk [vmem:[#allocation3 + $0x40] sm:$0xff] %vm1625_vm12, %v1546_v56 }
 0x1b1   : > { %1039 = vrot.lane.b32.xlu0 %v4207_v58, %s2470_s5 }
 0x1b2   : > { %v1418_v35 = vpop.permute.xlu1 %1417 }
 0x1b3   : > { %1503 = vst.msk [vmem:[#allocation3 + $0x58] sm:$0xff] %vm1491_vm11, %v1418_v35  ;;  %v1550_v27 = vpop.permute.xlu0 %1549  ;;  %v4216_v35 = vld [vmem:[#allocation39_spill] sm:$0xff] }
 0x1b4   : > { %1037 = vrot.lane.b32.xlu1 %v4205_v57, %s2470_s5  ;;  %1636 = vst.msk [vmem:[#allocation3 + $0x50] sm:$0xff] %vm1625_vm12, %v1550_v27 }
 0x1b5   : > { %1169 = vrot.lane.b32.xlu0 %v3159_v41, %s2471_s6 }
 0x1b6   : > { %v1548_v42 = vpop.permute.xlu1 %1547 }
 0x1b7   : > { %1635 = vst.msk [vmem:[#allocation3 + $0x48] sm:$0xff] %vm1625_vm12, %v1548_v42  ;;  %v885_v34 = vpop.permute.xlu0 %884  ;;  %v1666_v28 = vld [vmem:[#allocation3 + $0x40] sm:$0xff]  ;;  %v4217_v42 = vld [vmem:[#allocation41_spill] sm:$0xff] }
 0x1b8   : > { %1041 = vrot.lane.b32.xlu1 %v4208_v12, %s2470_s5  ;;  %969 = vst.msk [vmem:[#allocation3 + $0x60] sm:$0xff] %vm956_vm7, %v885_v34 }
 0x1b9   : > { %1173 = vrot.lane.b32.xlu0 %v3172_v25, %s2471_s6 }
 0x1ba   : > { %v1552_v17 = vpop.permute.xlu1 %1551 }
 0x1bb   : > { %1637 = vst.msk [vmem:[#allocation3 + $0x58] sm:$0xff] %vm1625_vm12, %v1552_v17  ;;  %v889_v7 = vpop.permute.xlu0 %888  ;;  %v1668_v51 = vld [vmem:[#allocation3 + $0x50] sm:$0xff] }
 0x1bc   : > { %1171 = vrot.lane.b32.xlu1 %v3179_v49, %s2471_s6  ;;  %971 = vst.msk [vmem:[#allocation3 + $0x70] sm:$0xff] %vm956_vm7, %v889_v7 }
 0x1bd   : > { %1300 = vrot.lane.b32.xlu0 %v2851_v44, %s2472_s7 }
 0x1be   : > { %v887_v41 = vpop.permute.xlu1 %886  ;;  %v1667_v4 = vld [vmem:[#allocation3 + $0x48] sm:$0xff] }
 0x1bf   : > { %970 = vst.msk [vmem:[#allocation3 + $0x68] sm:$0xff] %vm956_vm7, %v887_v41  ;;  %v1694_v52 = vpack.c.bf16 %v1667_v4, %v1666_v28  ;;  %v1020_v40 = vpop.permute.xlu0 %1019  ;;  %v352_v28 = vld [vmem:[#allocation2 + $0x180] sm:$0xff] }
 0x1c0   : > { %1175 = vrot.lane.b32.xlu1 %v3193_v39, %s2471_s6  ;;  %1104 = vst.msk [vmem:[#allocation3 + $0x60] sm:$0xff] %vm1091_vm8, %v1020_v40  ;;  %v990_v4 = vrot.slane %v352_v28, 1  ;;  %v354_v40 = vld [vmem:[#allocation2 + $0x190] sm:$0x3] }
 0x1c1   : > { %2319 = vmatprep.mubr.msk.bf16.mxu0 %vm1726_vm13, %v1694_v52  ;;  %1304 = vrot.lane.b32.xlu0 %v2855_v50, %s2472_s7 }
 0x1c2   : > { %v891_v49 = vpop.permute.xlu1 %890  ;;  %v1669_v9 = vld [vmem:[#allocation3 + $0x58] sm:$0xff] }
 0x1c3   : > { %972 = vst.msk [vmem:[#allocation3 + $0x78] sm:$0xff] %vm956_vm7, %v891_v49  ;;  %v1695_v44 = vpack.c.bf16 %v1669_v9, %v1668_v51  ;;  %v1024_v37 = vpop.permute.xlu0 %1023 }
 0x1c4   : > { %1302 = vrot.lane.b32.xlu1 %v4206_v59, %s2472_s7  ;;  %1106 = vst.msk [vmem:[#allocation3 + $0x70] sm:$0xff] %vm1091_vm8, %v1024_v37 }
 0x1c5   : > { %2320 = vmatmul.mubr.msk.bf16.gmra.mrb[8].mxu0 %vm1726_vm13, %v1695_v44  ;;  %1435 = vrot.lane.b32.xlu0 %v4207_v58, %s2473_s10  ;;  %v993_v44 = vrot.slane %v354_v40, 1 }
 0x1c6   : > { %v1022_v53 = vpop.permute.xlu1 %1021 }
 0x1c7   : > { %1105 = vst.msk [vmem:[#allocation3 + $0x68] sm:$0xff] %vm1091_vm8, %v1022_v53  ;;  %v1154_v60 = vpop.permute.xlu0 %1153 }
 0x1c8   : > { %1306 = vrot.lane.b32.xlu1 %v4209_v62, %s2472_s7  ;;  %1238 = vst.msk [vmem:[#allocation3 + $0x60] sm:$0xff] %vm1225_vm9, %v1154_v60 }
 0x1c9   : > { %1439 = vrot.lane.b32.xlu0 %v4210_v45, %s2473_s10 }
 0x1ca   : > { %v1026_v46 = vpop.permute.xlu1 %1025 }
 0x1cb   : > { %1107 = vst.msk [vmem:[#allocation3 + $0x78] sm:$0xff] %vm1091_vm8, %v1026_v46  ;;  %v1158_v36 = vpop.permute.xlu0 %1157 }
 0x1cc   : > { %1437 = vrot.lane.b32.xlu1 %v4208_v12, %s2473_s10  ;;  %1240 = vst.msk [vmem:[#allocation3 + $0x70] sm:$0xff] %vm1225_vm9, %v1158_v36 }
 0x1cd   : > { %1569 = vrot.lane.b32.xlu0 %v3172_v25, %s2474_s26 }
 0x1ce   : > { %v1156_v11 = vpop.permute.xlu1 %1155 }
 0x1cf   : > { %1239 = vst.msk [vmem:[#allocation3 + $0x68] sm:$0xff] %vm1225_vm9, %v1156_v11  ;;  %v1285_v54 = vpop.permute.xlu0 %1284  ;;  %v1127_v11 = vrot.slane %v354_v40, 2 }
 0x1d0   : > { %1441 = vrot.lane.b32.xlu1 %v4211_v5, %s2473_s10  ;;  %1369 = vst.msk [vmem:[#allocation3 + $0x60] sm:$0xff] %vm1356_vm10, %v1285_v54 }
 0x1d1   : > { %1573 = vrot.lane.b32.xlu0 %v3185_v0, %s2474_s26 }
 0x1d2   : > { %v1160_v55 = vpop.permute.xlu1 %1159 }
 0x1d3   : > { %1241 = vst.msk [vmem:[#allocation3 + $0x78] sm:$0xff] %vm1225_vm9, %v1160_v55  ;;  %v1289_v47 = vpop.permute.xlu0 %1288 }
 0x1d4   : > { %1571 = vrot.lane.b32.xlu1 %v3193_v39, %s2474_s26  ;;  %1371 = vst.msk [vmem:[#allocation3 + $0x70] sm:$0xff] %vm1356_vm10, %v1289_v47 }
 0x1d5   : > { %908 = vrot.lane.b32.xlu0 %v2855_v50, %s2469_s4 }
 0x1d6   : > { %v1287_v25 = vpop.permute.xlu1 %1286 }
 0x1d7   : > { %1370 = vst.msk [vmem:[#allocation3 + $0x68] sm:$0xff] %vm1356_vm10, %v1287_v25  ;;  %v1420_v21 = vpop.permute.xlu0 %1419 }
 0x1d8   : > { %1575 = vrot.lane.b32.xlu1 %v3207_v1, %s2474_s26  ;;  %1504 = vst.msk [vmem:[#allocation3 + $0x60] sm:$0xff] %vm1491_vm11, %v1420_v21 }
 0x1d9   : > { %912 = vrot.lane.b32.xlu0 %v4212_v10, %s2469_s4 }
 0x1da   : > { %v1291_v29 = vpop.permute.xlu1 %1290 }
 0x1db   : > { %1372 = vst.msk [vmem:[#allocation3 + $0x78] sm:$0xff] %vm1356_vm10, %v1291_v29  ;;  %v1424_v39 = vpop.permute.xlu0 %1423  ;;  %v355_v29 = vld [vmem:[#allocation2 + $0x198] sm:$0xff] }
 0x1dc   : > { %910 = vrot.lane.b32.xlu1 %v4209_v62, %s2469_s4  ;;  %1506 = vst.msk [vmem:[#allocation3 + $0x70] sm:$0xff] %vm1491_vm11, %v1424_v39 }
 0x1dd   : > { %1043 = vrot.lane.b32.xlu0 %v4210_v45, %s2470_s5 }
 0x1de   : > { %v1422_v50 = vpop.permute.xlu1 %1421 }
 0x1df   : > { %1505 = vst.msk [vmem:[#allocation3 + $0x68] sm:$0xff] %vm1491_vm11, %v1422_v50  ;;  %v1554_v8 = vpop.permute.xlu0 %1553 }
 0x1e0   : > { %914 = vrot.lane.b32.xlu1 %v4213_v26, %s2469_s4  ;;  %1638 = vst.msk [vmem:[#allocation3 + $0x60] sm:$0xff] %vm1625_vm12, %v1554_v8 }
 0x1e1   : > { %1047 = vrot.lane.b32.xlu0 %v4214_v16, %s2470_s5 }
 0x1e2   : > { %v1426_v24 = vpop.permute.xlu1 %1425 }
 0x1e3   : > { %1507 = vst.msk [vmem:[#allocation3 + $0x78] sm:$0xff] %vm1491_vm11, %v1426_v24  ;;  %v1558_v30 = vpop.permute.xlu0 %1557  ;;  %v1390_v24 = vrot.slane %v355_v29, 1 }
 0x1e4   : > { %1045 = vrot.lane.b32.xlu1 %v4211_v5, %s2470_s5  ;;  %1640 = vst.msk [vmem:[#allocation3 + $0x70] sm:$0xff] %vm1625_vm12, %v1558_v30 }
 0x1e5   : > { %1177 = vrot.lane.b32.xlu0 %v3185_v0, %s2471_s6 }
 0x1e6   : > { %v1556_v3 = vpop.permute.xlu1 %1555 }
 0x1e7   : > { %1639 = vst.msk [vmem:[#allocation3 + $0x68] sm:$0xff] %vm1625_vm12, %v1556_v3  ;;  %v893_v2 = vpop.permute.xlu0 %892  ;;  %v1670_v33 = vld [vmem:[#allocation3 + $0x60] sm:$0xff] }
 0x1e8   : > { %1049 = vrot.lane.b32.xlu1 %v4215_v31, %s2470_s5  ;;  %973 = vst.msk [vmem:[#allocation3 + $0x80] sm:$0xff] %vm956_vm7, %v893_v2 }
 0x1e9   : > { %1181 = vrot.lane.b32.xlu0 %v3199_v43, %s2471_s6 }
 0x1ea   : > { %v1560_v32 = vpop.permute.xlu1 %1559 }
 0x1eb   : > { %1641 = vst.msk [vmem:[#allocation3 + $0x78] sm:$0xff] %vm1625_vm12, %v1560_v32  ;;  %v897_v57 = vpop.permute.xlu0 %896  ;;  %v1672_v61 = vld [vmem:[#allocation3 + $0x70] sm:$0xff] }
 0x1ec   : > { %1179 = vrot.lane.b32.xlu1 %v3207_v1, %s2471_s6  ;;  %975 = vst.msk [vmem:[#allocation3 + $0x90] sm:$0xff] %vm956_vm7, %v897_v57 }
 0x1ed   : > { %1308 = vrot.lane.b32.xlu0 %v4212_v10, %s2472_s7 }
 0x1ee   : > { %v895_v0 = vpop.permute.xlu1 %894  ;;  %v1671_v48 = vld [vmem:[#allocation3 + $0x68] sm:$0xff] }
 0x1ef   : > { %974 = vst.msk [vmem:[#allocation3 + $0x88] sm:$0xff] %vm956_vm7, %v895_v0  ;;  %v1696_v13 = vpack.c.bf16 %v1671_v48, %v1670_v33  ;;  %v1028_v23 = vpop.permute.xlu0 %1027  ;;  %v1524_v0 = vrot.slane %v355_v29, 2 }
 0x1f0   : > { %1183 = vrot.lane.b32.xlu1 %v3220_v6, %s2471_s6  ;;  %1108 = vst.msk [vmem:[#allocation3 + $0x80] sm:$0xff] %vm1091_vm8, %v1028_v23 }
 0x1f1   : > { %2323 = vmatprep.mubr.msk.bf16.mxu0 %vm1726_vm13, %v1696_v13  ;;  %1312 = vrot.lane.b32.xlu0 %v2881_v14, %s2472_s7 }
 0x1f2   : > { %v899_v1 = vpop.permute.xlu1 %898  ;;  %v1673_v19 = vld [vmem:[#allocation3 + $0x78] sm:$0xff] }
 0x1f3   : > { %976 = vst.msk [vmem:[#allocation3 + $0x98] sm:$0xff] %vm956_vm7, %v899_v1  ;;  %v1697_v63 = vpack.c.bf16 %v1673_v19, %v1672_v61  ;;  %v1032_v38 = vpop.permute.xlu0 %1031 }
 0x1f4   : > { %1310 = vrot.lane.b32.xlu1 %v4213_v26, %s2472_s7  ;;  %1110 = vst.msk [vmem:[#allocation3 + $0x90] sm:$0xff] %vm1091_vm8, %v1032_v38  ;;  %v356_v26 = vld [vmem:[#allocation2 + $0x1a0] sm:$0xff] }
 0x1f5   : > { %2324 = vmatmul.mubr.msk.bf16.gmra.mrb[12].mxu0 %vm1726_vm13, %v1697_v63  ;;  %1443 = vrot.lane.b32.xlu0 %v4214_v16, %s2473_s10  ;;  %v1391_v16 = vrot.slane %v356_v26, 1  ;;  %v1525_v48 = vrot.slane %v356_v26, 2 }
 0x1f6   : > { %v1030_v15 = vpop.permute.xlu1 %1029 }
 0x1f7   : > { %1109 = vst.msk [vmem:[#allocation3 + $0x88] sm:$0xff] %vm1091_vm8, %v1030_v15  ;;  %v1162_v59 = vpop.permute.xlu0 %1161  ;;  %v1392_v2 = vsel %vm438_vm2, %v1390_v24, %v1391_v16  ;;  %v1526_v1 = vsel %vm648_vm3, %v1524_v0, %v1525_v48 }
 0x1f8   : > { %1314 = vrot.lane.b32.xlu1 %v2890_v20, %s2472_s7  ;;  %1242 = vst.msk [vmem:[#allocation3 + $0x80] sm:$0xff] %vm1225_vm9, %v1162_v59 }
 0x1f9   : > { %1447 = vrot.lane.b32.xlu0 %v4216_v35, %s2473_s10 }
 0x1fa   : > { %v1034_v56 = vpop.permute.xlu1 %1033 }
 0x1fb   : > { %1111 = vst.msk [vmem:[#allocation3 + $0x98] sm:$0xff] %vm1091_vm8, %v1034_v56  ;;  %v1166_v58 = vpop.permute.xlu0 %1165 }
 0x1fc   : > { %1445 = vrot.lane.b32.xlu1 %v4215_v31, %s2473_s10  ;;  %1244 = vst.msk [vmem:[#allocation3 + $0x90] sm:$0xff] %vm1225_vm9, %v1166_v58  ;;  %v357_v31 = vld [vmem:[#allocation2 + $0x1a8] sm:$0x3] }
 0x1fd   : > { %1577 = vrot.lane.b32.xlu0 %v3199_v43, %s2474_s26  ;;  %v1393_v33 = vrot.slane %v357_v31, 1  ;;  %v1527_v63 = vrot.slane %v357_v31, 2 }
 0x1fe   : > { %v1164_v27 = vpop.permute.xlu1 %1163 }
 0x1ff   : > { %1243 = vst.msk [vmem:[#allocation3 + $0x88] sm:$0xff] %vm1225_vm9, %v1164_v27  ;;  %v1293_v12 = vpop.permute.xlu0 %1292  ;;  %v1394_v61 = vsel %vm438_vm2, %v1391_v16, %v1393_v33  ;;  %v1528_v59 = vsel %vm648_vm3, %v1525_v48, %v1527_v63 }
 0x200   : > { %1449 = vrot.lane.b32.xlu1 %v4217_v42, %s2473_s10  ;;  %1373 = vst.msk [vmem:[#allocation3 + $0x80] sm:$0xff] %vm1356_vm10, %v1293_v12 }
 0x201   : > { %1581 = vrot.lane.b32.xlu0 %v3214_v18, %s2474_s26 }
 0x202   : > { %v1168_v34 = vpop.permute.xlu1 %1167 }
 0x203   : > { %1245 = vst.msk [vmem:[#allocation3 + $0x98] sm:$0xff] %vm1225_vm9, %v1168_v34  ;;  %v1297_v17 = vpop.permute.xlu0 %1296 }
 0x204   : > { %1579 = vrot.lane.b32.xlu1 %v3220_v6, %s2474_s26  ;;  %1375 = vst.msk [vmem:[#allocation3 + $0x90] sm:$0xff] %vm1356_vm10, %v1297_v17  ;;  %v353_v6 = vld [vmem:[#allocation2 + $0x188] sm:$0xff] }
 0x205   : > { %916 = vrot.lane.b32.xlu0 %v2881_v14, %s2469_s4  ;;  %v991_v52 = vrot.slane %v353_v6, 1  ;;  %v1125_v53 = vrot.slane %v353_v6, 2 }
 0x206   : > { %v1295_v43 = vpop.permute.xlu1 %1294 }
 0x207   : > { %1374 = vst.msk [vmem:[#allocation3 + $0x88] sm:$0xff] %vm1356_vm10, %v1295_v43  ;;  %v1428_v7 = vpop.permute.xlu0 %1427  ;;  %v992_v49 = vsel %vm438_vm2, %v990_v4, %v991_v52  ;;  %v994_v60 = vsel %vm438_vm2, %v991_v52, %v993_v44  ;;  %v1128_v55 = vsel %vm648_vm3, %v1125_v53, %v1127_v11 }
 0x208   : > { %1583 = vrot.lane.b32.xlu1 %v3230_v22, %s2474_s26  ;;  %1508 = vst.msk [vmem:[#allocation3 + $0x80] sm:$0xff] %vm1491_vm11, %v1428_v7 }
 0x209   : > { %920 = vrot.lane.b32.xlu0 %v352_v28, %s2469_s4 }
 0x20a   : > { %v1299_v41 = vpop.permute.xlu1 %1298 }
 0x20b   : > { %1376 = vst.msk [vmem:[#allocation3 + $0x98] sm:$0xff] %vm1356_vm10, %v1299_v41  ;;  %v1432_v14 = vpop.permute.xlu0 %1431 }
 0x20c   : > { %918 = vrot.lane.b32.xlu1 %v2890_v20, %s2469_s4  ;;  %1510 = vst.msk [vmem:[#allocation3 + $0x90] sm:$0xff] %vm1491_vm11, %v1432_v14  ;;  %v1124_v20 = vrot.slane %v352_v28, 2 }
 0x20d   : > { %1051 = vrot.lane.b32.xlu0 %v4216_v35, %s2470_s5 }
 0x20e   : > { %v1430_v51 = vpop.permute.xlu1 %1429  ;;  %v1126_v45 = vsel %vm648_vm3, %v1124_v20, %v1125_v53 }
 0x20f   : > { %1509 = vst.msk [vmem:[#allocation3 + $0x88] sm:$0xff] %vm1491_vm11, %v1430_v51  ;;  %v1562_v9 = vpop.permute.xlu0 %1561 }
 0x210   : > { %922 = vrot.lane.b32.xlu1 %v353_v6, %s2469_s4  ;;  %1642 = vst.msk [vmem:[#allocation3 + $0x80] sm:$0xff] %vm1625_vm12, %v1562_v9  ;;  %s171_s4 = scalar_lea.vmem [#allocation4], %s2256_s25 }
 0x211   : > { %1055 = vrot.lane.b32.xlu0 %v992_v49, %s2470_s5 }
 0x212   : > { %v1434_v37 = vpop.permute.xlu1 %1433 }
 0x213   : > { %1511 = vst.msk [vmem:[#allocation3 + $0x98] sm:$0xff] %vm1491_vm11, %v1434_v37  ;;  %v1566_v62 = vpop.permute.xlu0 %1565 }
 0x214   : > { %1053 = vrot.lane.b32.xlu1 %v4217_v42, %s2470_s5  ;;  %1644 = vst.msk [vmem:[#allocation3 + $0x90] sm:$0xff] %vm1625_vm12, %v1566_v62 }
 0x215   : > { %1185 = vrot.lane.b32.xlu0 %v3214_v18, %s2471_s6 }
 0x216   : > { %v1564_v46 = vpop.permute.xlu1 %1563 }
 0x217   : > { %1643 = vst.msk [vmem:[#allocation3 + $0x88] sm:$0xff] %vm1625_vm12, %v1564_v46  ;;  %v901_v36 = vpop.permute.xlu0 %900  ;;  %v1674_v54 = vld [vmem:[#allocation3 + $0x80] sm:$0xff] }
 0x218   : > { %1057 = vrot.lane.b32.xlu1 %v994_v60, %s2470_s5  ;;  %977 = vst.msk [vmem:[#allocation3 + $0xa0] sm:$0xff] %vm956_vm7, %v901_v36  ;;  %s2168_s5 = sshll.u32 %s171_s4, 4  ;;  %s4032_s5 = int_to_ptr.vmem [resolvable:$true] %s2168_s5 }
 0x219   : > { %1189 = vrot.lane.b32.xlu0 %v1126_v45, %s2471_s6  ;;  %p2409_p0 = scmp.lt.s32.totalorder %s4032_s5, %s2407_s11 }
 0x21a   : > { %v1568_v5 = vpop.permute.xlu1 %1567 }
 0x21b   : > { %1645 = vst.msk [vmem:[#allocation3 + $0x98] sm:$0xff] %vm1625_vm12, %v1568_v5  ;;  %v905_v18 = vpop.permute.xlu0 %904  ;;  %v1676_v10 = vld [vmem:[#allocation3 + $0x90] sm:$0xff] }
 0x21c   : > { %1187 = vrot.lane.b32.xlu1 %v3230_v22, %s2471_s6  ;;  %979 = vst.msk [vmem:[#allocation3 + $0xb0] sm:$0xff] %vm956_vm7, %v905_v18 }
 0x21d   : > { %1316 = vrot.lane.b32.xlu0 %v352_v28, %s2472_s7 }
 0x21e   : > { %v903_v47 = vpop.permute.xlu1 %902  ;;  %v1675_v25 = vld [vmem:[#allocation3 + $0x88] sm:$0xff] }
 0x21f   : > { %978 = vst.msk [vmem:[#allocation3 + $0xa8] sm:$0xff] %vm956_vm7, %v903_v47  ;;  %v1698_v21 = vpack.c.bf16 %v1675_v25, %v1674_v54  ;;  %v1036_v39 = vpop.permute.xlu0 %1035 }
 0x220   : > { %1191 = vrot.lane.b32.xlu1 %v1128_v55, %s2471_s6  ;;  %1112 = vst.msk [vmem:[#allocation3 + $0xa0] sm:$0xff] %vm1091_vm8, %v1036_v39 }
 0x221   : > { %2327 = vmatprep.mubr.msk.bf16.mxu1 %vm1726_vm13, %v1698_v21  ;;  %1320 = vrot.lane.b32.xlu0 %v355_v29, %s2472_s7 }
 0x222   : > { %v907_v22 = vpop.permute.xlu1 %906  ;;  %v1677_v50 = vld [vmem:[#allocation3 + $0x98] sm:$0xff] }
 0x223   : > { %980 = vst.msk [vmem:[#allocation3 + $0xb8] sm:$0xff] %vm956_vm7, %v907_v22  ;;  %v1699_v8 = vpack.c.bf16 %v1677_v50, %v1676_v10  ;;  %v1040_v30 = vpop.permute.xlu0 %1039 }
 0x224   : > { %1318 = vrot.lane.b32.xlu1 %v353_v6, %s2472_s7  ;;  %1114 = vst.msk [vmem:[#allocation3 + $0xb0] sm:$0xff] %vm1091_vm8, %v1040_v30 }
 0x225   : > { %2328 = vmatmul.mubr.msk.bf16.vlgmr.msra.gmra.mrb[0].mxu1 %vm1726_vm13, %v1699_v8  ;;  %1451 = vrot.lane.b32.xlu0 %v992_v49, %s2473_s10 }
 0x226   : > { %v1038_v3 = vpop.permute.xlu1 %1037 }
 0x227   : > { %1113 = vst.msk [vmem:[#allocation3 + $0xa8] sm:$0xff] %vm1091_vm8, %v1038_v3  ;;  %v1170_v32 = vpop.permute.xlu0 %1169 }
 0x228   : > { %1322 = vrot.lane.b32.xlu1 %v356_v26, %s2472_s7  ;;  %1246 = vst.msk [vmem:[#allocation3 + $0xa0] sm:$0xff] %vm1225_vm9, %v1170_v32 }
 0x229   : > { %1455 = vrot.lane.b32.xlu0 %v1392_v2, %s2473_s10 }
 0x22a   : > { %v1042_v57 = vpop.permute.xlu1 %1041 }
 0x22b   : > { %1115 = vst.msk [vmem:[#allocation3 + $0xb8] sm:$0xff] %vm1091_vm8, %v1042_v57  ;;  %v1174_v13 = vpop.permute.xlu0 %1173 }
 0x22c   : > { %1453 = vrot.lane.b32.xlu1 %v994_v60, %s2473_s10  ;;  %1248 = vst.msk [vmem:[#allocation3 + $0xb0] sm:$0xff] %vm1225_vm9, %v1174_v13 }
 0x22d   : > { %1585 = vrot.lane.b32.xlu0 %v1126_v45, %s2474_s26 }
 0x22e   : > { %v1172_v23 = vpop.permute.xlu1 %1171 }
 0x22f   : > { %1247 = vst.msk [vmem:[#allocation3 + $0xa8] sm:$0xff] %vm1225_vm9, %v1172_v23  ;;  %v1301_v19 = vpop.permute.xlu0 %1300 }
 0x230   : > { %1457 = vrot.lane.b32.xlu1 %v1394_v61, %s2473_s10  ;;  %1377 = vst.msk [vmem:[#allocation3 + $0xa0] sm:$0xff] %vm1356_vm10, %v1301_v19  ;;  %s2402_s10 = scalar_lea.vmem %s4032_s5, 32 }
 0x231   : > { %1589 = vrot.lane.b32.xlu0 %v1526_v1, %s2474_s26  ;;  %p2403_p11 = scmp.ne.s32.totalorder %s4032_s5, %s2402_s10  ;;  %p2410_p1 = scmp.lt.s32.totalorder %s2408_s17, %s2402_s10 }
 0x232   : > { %v1176_v38 = vpop.permute.xlu1 %1175 }
 0x233   : > { %1249 = vst.msk [vmem:[#allocation3 + $0xb8] sm:$0xff] %vm1225_vm9, %v1176_v38  ;;  %v1305_v15 = vpop.permute.xlu0 %1304  ;;  %p2404_p12 = pnand %p2403_p11, %p2534_p5  ;;  %p2411_p2 = por %p2410_p1, %p2409_p0 }
 0x234   : > { %1587 = vrot.lane.b32.xlu1 %v1128_v55, %s2474_s26  ;;  %1379 = vst.msk [vmem:[#allocation3 + $0xb0] sm:$0xff] %vm1356_vm10, %v1305_v15 }
 0x235   : > { %p2405_p13 = pneg %p2404_p12 }
 0x236   : > { %v1303_v56 = vpop.permute.xlu1 %1302 }
 0x237   : > { %1378 = vst.msk [vmem:[#allocation3 + $0xa8] sm:$0xff] %vm1356_vm10, %v1303_v56  ;;  %v1436_v35 = vpop.permute.xlu0 %1435  ;;  %p2412_p3 = pnand %p2411_p2, %p2405_p13 }
 0x238   : > { %1591 = vrot.lane.b32.xlu1 %v1528_v59, %s2474_s26  ;;  %1512 = vst.msk [vmem:[#allocation3 + $0xa0] sm:$0xff] %vm1491_vm11, %v1436_v35 }
 0x23a   : > { %v1307_v58 = vpop.permute.xlu1 %1306 }
 0x23b   : > { %1380 = vst.msk [vmem:[#allocation3 + $0xb8] sm:$0xff] %vm1356_vm10, %v1307_v58  ;;  %v1440_v27 = vpop.permute.xlu0 %1439 }
 0x23c   : > { %1514 = vst.msk [vmem:[#allocation3 + $0xb0] sm:$0xff] %vm1491_vm11, %v1440_v27 }
 0x23e   : > { %v1438_v42 = vpop.permute.xlu1 %1437 }
 0x23f   : > { %1513 = vst.msk [vmem:[#allocation3 + $0xa8] sm:$0xff] %vm1491_vm11, %v1438_v42  ;;  %v1570_v34 = vpop.permute.xlu0 %1569 }
 0x240   : > { %v2313_v12 = vpop.f32.mrb[0].mxu0  ;;  %1646 = vst.msk [vmem:[#allocation3 + $0xa0] sm:$0xff] %vm1625_vm12, %v1570_v34 }
 0x241   : > { %1943 = vst.msk [vmem:[%s3832_s29 + $0x10] sm:$0xff] %vm1940_vm14, %v2313_v12  ;;  %v1813_v17 = vpop.f32.mrb[1].mxu0  ;;  %v2046_v6 = vmul.f32 %v2313_v12, %v2313_v12  ;;  %v1976_v49 = vsel %vm1940_vm14, %v2313_v12, 0.0 }
 0x242   : > { %1941 = vst.msk [vmem:[%s3832_s29] sm:$0xff] %vm1940_vm14, %v1813_v17  ;;  %v2044_v43 = vmul.f32 %v1813_v17, %v1813_v17  ;;  %v1442_v28 = vpop.permute.xlu1 %1441  ;;  %v2314_v7 = vpop.f32.mrb[2].mxu0  ;;  %v1973_v4 = vsel %vm1940_vm14, %v1813_v17, 0.0 }
 0x243   : > { %1515 = vst.msk [vmem:[#allocation3 + $0xb8] sm:$0xff] %vm1491_vm11, %v1442_v28  ;;  %v1816_v41 = vpop.f32.mrb[3].mxu0  ;;  %v1574_v51 = vpop.permute.xlu0 %1573  ;;  %v2047_v44 = vmul.f32 %v2314_v7, %v2314_v7  ;;  %v2079_v60 = vsel %vm1940_vm14, %v2046_v6, 0.0  ;;  %v1978_v46 = vsel %vm1940_vm14, %v2314_v7, 0.0 }
 0x244   : > { %1944 = vst.msk [vmem:[%s3832_s29 + $0x18] sm:$0xff] %vm1940_vm14, %v2314_v7  ;;  %1942 = vst.msk [vmem:[%s3832_s29 + $0x8] sm:$0xff] %vm1940_vm14, %v1816_v41  ;;  %v1974_v52 = vsel %vm1940_vm14, %v1816_v41, 0.0  ;;  %v2045_v14 = vmul.f32 %v1816_v41, %v1816_v41  ;;  %v2076_v9 = vsel %vm1940_vm14, %v2044_v43, 0.0 }
 0x245   : > { %v1975_v40 = vadd.f32 %v1974_v52, %v1973_v4  ;;  %1648 = vst.msk [vmem:[#allocation3 + $0xb0] sm:$0xff] %vm1625_vm12, %v1574_v51  ;;  %v2081_v5 = vsel %vm1940_vm14, %v2047_v44, 0.0 }
 0x246   : > { %v2077_v37 = vsel %vm1940_vm14, %v2045_v14, 0.0  ;;  %v1572_v20 = vpop.permute.xlu1 %1571 }
 0x247   : > { %v1977_v53 = vadd.f32 %v1976_v49, %v1975_v40  ;;  %v2078_v62 = vadd.f32 %v2077_v37, %v2076_v9  ;;  %1647 = vst.msk [vmem:[#allocation3 + $0xa8] sm:$0xff] %vm1625_vm12, %v1572_v20  ;;  %v909_v45 = vpop.permute.xlu0 %908  ;;  %v1678_v55 = vld [vmem:[#allocation3 + $0xa0] sm:$0xff] }
 0x248   : > { %981 = vst.msk [vmem:[#allocation3 + $0xc0] sm:$0xff] %vm956_vm7, %v909_v45 }
 0x249   : > { %v2080_v36 = vadd.f32 %v2079_v60, %v2078_v62  ;;  %v1979_v11 = vadd.f32 %v1978_v46, %v1977_v53 }
 0x24a   : > { %v1576_v54 = vpop.permute.xlu1 %1575 }
 0x24b   : > { %1649 = vst.msk [vmem:[#allocation3 + $0xb8] sm:$0xff] %vm1625_vm12, %v1576_v54  ;;  %v2082_v18 = vadd.f32 %v2081_v5, %v2080_v36  ;;  %v913_v47 = vpop.permute.xlu0 %912 }
 0x24c   : > { %983 = vst.msk [vmem:[#allocation3 + $0xd0] sm:$0xff] %vm956_vm7, %v913_v47  ;;  %v1680_v10 = vld [vmem:[#allocation3 + $0xb0] sm:$0xff] }
 0x24e   : > { %v911_v25 = vpop.permute.xlu1 %910  ;;  %v1679_v21 = vld [vmem:[#allocation3 + $0xa8] sm:$0xff] }
 0x24f   : > { %982 = vst.msk [vmem:[#allocation3 + $0xc8] sm:$0xff] %vm956_vm7, %v911_v25  ;;  %v1700_v29 = vpack.c.bf16 %v1679_v21, %v1678_v55  ;;  %v1044_v39 = vpop.permute.xlu0 %1043 }
 0x250   : > { %1116 = vst.msk [vmem:[#allocation3 + $0xc0] sm:$0xff] %vm1091_vm8, %v1044_v39 }
 0x251   : > { %2331 = vmatprep.mubr.msk.bf16.mxu1 %vm1726_vm13, %v1700_v29 }
 0x252   : > { %v915_v22 = vpop.permute.xlu1 %914  ;;  %v1681_v50 = vld [vmem:[#allocation3 + $0xb8] sm:$0xff] }
 0x253   : > { %984 = vst.msk [vmem:[#allocation3 + $0xd8] sm:$0xff] %vm956_vm7, %v915_v22  ;;  %v1701_v26 = vpack.c.bf16 %v1681_v50, %v1680_v10  ;;  %v1048_v8 = vpop.permute.xlu0 %1047 }
 0x254   : > { %1118 = vst.msk [vmem:[#allocation3 + $0xd0] sm:$0xff] %vm1091_vm8, %v1048_v8 }
 0x255   : > { %2332 = vmatmul.mubr.msk.bf16.gmra.mrb[4].mxu1 %vm1726_vm13, %v1701_v26 }
 0x256   : > { %v1046_v24 = vpop.permute.xlu1 %1045 }
 0x257   : > { %1117 = vst.msk [vmem:[#allocation3 + $0xc8] sm:$0xff] %vm1091_vm8, %v1046_v24  ;;  %v1178_v16 = vpop.permute.xlu0 %1177 }
 0x258   : > { %1250 = vst.msk [vmem:[#allocation3 + $0xc0] sm:$0xff] %vm1225_vm9, %v1178_v16 }
 0x25a   : > { %v1050_v30 = vpop.permute.xlu1 %1049 }
 0x25b   : > { %1119 = vst.msk [vmem:[#allocation3 + $0xd8] sm:$0xff] %vm1091_vm8, %v1050_v30  ;;  %v1182_v3 = vpop.permute.xlu0 %1181 }
 0x25c   : > { %1252 = vst.msk [vmem:[#allocation3 + $0xd0] sm:$0xff] %vm1225_vm9, %v1182_v3 }
 0x25e   : > { %v1180_v31 = vpop.permute.xlu1 %1179 }
 0x25f   : > { %1251 = vst.msk [vmem:[#allocation3 + $0xc8] sm:$0xff] %vm1225_vm9, %v1180_v31  ;;  %v1309_v2 = vpop.permute.xlu0 %1308 }
 0x260   : > { %1381 = vst.msk [vmem:[#allocation3 + $0xc0] sm:$0xff] %vm1356_vm10, %v1309_v2 }
 0x262   : > { %v1184_v32 = vpop.permute.xlu1 %1183 }
 0x263   : > { %1253 = vst.msk [vmem:[#allocation3 + $0xd8] sm:$0xff] %vm1225_vm9, %v1184_v32  ;;  %v1313_v33 = vpop.permute.xlu0 %1312 }
 0x264   : > { %1383 = vst.msk [vmem:[#allocation3 + $0xd0] sm:$0xff] %vm1356_vm10, %v1313_v33 }
 0x266   : > { %v1311_v57 = vpop.permute.xlu1 %1310 }
 0x267   : > { %1382 = vst.msk [vmem:[#allocation3 + $0xc8] sm:$0xff] %vm1356_vm10, %v1311_v57  ;;  %v1444_v48 = vpop.permute.xlu0 %1443 }
 0x268   : > { %v2317_v0 = vpop.f32.mrb[4].mxu0  ;;  %1516 = vst.msk [vmem:[#allocation3 + $0xc0] sm:$0xff] %vm1491_vm11, %v1444_v48 }
 0x269   : > { %1947 = vst.msk [vmem:[%s3832_s29 + $0x30] sm:$0xff] %vm1940_vm14, %v2317_v0  ;;  %v1829_v13 = vpop.f32.mrb[5].mxu0  ;;  %v2050_v15 = vmul.f32 %v2317_v0, %v2317_v0  ;;  %v1984_v12 = vsel %vm1940_vm14, %v2317_v0, 0.0 }
 0x26a   : > { %1945 = vst.msk [vmem:[%s3832_s29 + $0x20] sm:$0xff] %vm1940_vm14, %v1829_v13  ;;  %v1980_v61 = vsel %vm1940_vm14, %v1829_v13, 0.0  ;;  %v2048_v23 = vmul.f32 %v1829_v13, %v1829_v13  ;;  %v1315_v1 = vpop.permute.xlu1 %1314  ;;  %v2318_v19 = vpop.f32.mrb[6].mxu0 }
 0x26b   : > { %v1981_v63 = vadd.f32 %v1980_v61, %v1979_v11  ;;  %1384 = vst.msk [vmem:[#allocation3 + $0xd8] sm:$0xff] %vm1356_vm10, %v1315_v1  ;;  %v1832_v38 = vpop.f32.mrb[7].mxu0  ;;  %v1448_v58 = vpop.permute.xlu0 %1447  ;;  %v2051_v34 = vmul.f32 %v2318_v19, %v2318_v19  ;;  %v2087_v41 = vsel %vm1940_vm14, %v2050_v15, 0.0  ;;  %v1986_v6 = vsel %vm1940_vm14, %v2318_v19, 0.0 }
 0x26c   : > { %1948 = vst.msk [vmem:[%s3832_s29 + $0x38] sm:$0xff] %vm1940_vm14, %v2318_v19  ;;  %v2083_v59 = vsel %vm1940_vm14, %v2048_v23, 0.0  ;;  %1946 = vst.msk [vmem:[%s3832_s29 + $0x28] sm:$0xff] %vm1940_vm14, %v1832_v38  ;;  %v1982_v56 = vsel %vm1940_vm14, %v1832_v38, 0.0  ;;  %v2049_v35 = vmul.f32 %v1832_v38, %v1832_v38 }
 0x26d   : > { %v2084_v27 = vadd.f32 %v2083_v59, %v2082_v18  ;;  %v1983_v42 = vadd.f32 %v1982_v56, %v1981_v63  ;;  %1518 = vst.msk [vmem:[#allocation3 + $0xd0] sm:$0xff] %vm1491_vm11, %v1448_v58  ;;  %v2089_v51 = vsel %vm1940_vm14, %v2051_v34, 0.0 }
 0x26e   : > { %v2085_v17 = vsel %vm1940_vm14, %v2049_v35, 0.0  ;;  %v1446_v43 = vpop.permute.xlu1 %1445 }
 0x26f   : > { %v1985_v28 = vadd.f32 %v1984_v12, %v1983_v42  ;;  %v2086_v7 = vadd.f32 %v2085_v17, %v2084_v27  ;;  %1517 = vst.msk [vmem:[#allocation3 + $0xc8] sm:$0xff] %vm1491_vm11, %v1446_v43  ;;  %v1578_v4 = vpop.permute.xlu0 %1577 }
 0x270   : > { %1650 = vst.msk [vmem:[#allocation3 + $0xc0] sm:$0xff] %vm1625_vm12, %v1578_v4 }
 0x271   : > { %v2088_v52 = vadd.f32 %v2087_v41, %v2086_v7  ;;  %v1987_v14 = vadd.f32 %v1986_v6, %v1985_v28 }
 0x272   : > { %v1450_v40 = vpop.permute.xlu1 %1449 }
 0x273   : > { %1519 = vst.msk [vmem:[#allocation3 + $0xd8] sm:$0xff] %vm1491_vm11, %v1450_v40  ;;  %v3895_v49 = vadd.f32 %v2089_v51, %v2088_v52  ;;  %v1582_v9 = vpop.permute.xlu0 %1581 }
 0x274   : > { %1652 = vst.msk [vmem:[#allocation3 + $0xd0] sm:$0xff] %vm1625_vm12, %v1582_v9 }
 0x276   : > { %v1580_v44 = vpop.permute.xlu1 %1579 }
 0x277   : > { %1651 = vst.msk [vmem:[#allocation3 + $0xc8] sm:$0xff] %vm1625_vm12, %v1580_v44  ;;  %v917_v37 = vpop.permute.xlu0 %916  ;;  %v1682_v53 = vld [vmem:[#allocation3 + $0xc0] sm:$0xff] }
 0x278   : > { %985 = vst.msk [vmem:[#allocation3 + $0xe0] sm:$0xff] %vm956_vm7, %v917_v37 }
 0x27a   : > { %v1584_v20 = vpop.permute.xlu1 %1583 }
 0x27b   : > { %1653 = vst.msk [vmem:[#allocation3 + $0xd8] sm:$0xff] %vm1625_vm12, %v1584_v20  ;;  %v921_v62 = vpop.permute.xlu0 %920  ;;  %v1684_v36 = vld [vmem:[#allocation3 + $0xd0] sm:$0xff] }
 0x27c   : > { %987 = vst.msk [vmem:[#allocation3 + $0xf0] sm:$0xff] %vm956_vm7, %v921_v62 }
 0x27e   : > { %v919_v60 = vpop.permute.xlu1 %918  ;;  %v1683_v46 = vld [vmem:[#allocation3 + $0xc8] sm:$0xff] }
 0x27f   : > { %986 = vst.msk [vmem:[#allocation3 + $0xe8] sm:$0xff] %vm956_vm7, %v919_v60  ;;  %v1702_v45 = vpack.c.bf16 %v1683_v46, %v1682_v53  ;;  %v1052_v11 = vpop.permute.xlu0 %1051 }
 0x280   : > { %1120 = vst.msk [vmem:[#allocation3 + $0xe0] sm:$0xff] %vm1091_vm8, %v1052_v11 }
 0x281   : > { %2335 = vmatprep.mubr.msk.bf16.mxu1 %vm1726_vm13, %v1702_v45 }
 0x282   : > { %v923_v5 = vpop.permute.xlu1 %922  ;;  %v1685_v54 = vld [vmem:[#allocation3 + $0xd8] sm:$0xff] }
 0x283   : > { %988 = vst.msk [vmem:[#allocation3 + $0xf8] sm:$0xff] %vm956_vm7, %v923_v5  ;;  %v1703_v18 = vpack.c.bf16 %v1685_v54, %v1684_v36  ;;  %v1056_v55 = vpop.permute.xlu0 %1055 }
 0x284   : > { %1122 = vst.msk [vmem:[#allocation3 + $0xf0] sm:$0xff] %vm1091_vm8, %v1056_v55 }
 0x285   : > { %2336 = vmatmul.mubr.msk.bf16.gmra.mrb[8].mxu1 %vm1726_vm13, %v1703_v18 }
 0x286   : > { %v1054_v47 = vpop.permute.xlu1 %1053 }
 0x287   : > { %1121 = vst.msk [vmem:[#allocation3 + $0xe8] sm:$0xff] %vm1091_vm8, %v1054_v47  ;;  %v1186_v25 = vpop.permute.xlu0 %1185 }
 0x288   : > { %1254 = vst.msk [vmem:[#allocation3 + $0xe0] sm:$0xff] %vm1225_vm9, %v1186_v25 }
 0x28a   : > { %v1058_v21 = vpop.permute.xlu1 %1057 }
 0x28b   : > { %1123 = vst.msk [vmem:[#allocation3 + $0xf8] sm:$0xff] %vm1091_vm8, %v1058_v21  ;;  %v1190_v29 = vpop.permute.xlu0 %1189 }
 0x28c   : > { %1256 = vst.msk [vmem:[#allocation3 + $0xf0] sm:$0xff] %vm1225_vm9, %v1190_v29 }
 0x28e   : > { %v1188_v10 = vpop.permute.xlu1 %1187 }
 0x28f   : > { %1255 = vst.msk [vmem:[#allocation3 + $0xe8] sm:$0xff] %vm1225_vm9, %v1188_v10  ;;  %v1317_v39 = vpop.permute.xlu0 %1316 }
 0x290   : > { %1385 = vst.msk [vmem:[#allocation3 + $0xe0] sm:$0xff] %vm1356_vm10, %v1317_v39 }
 0x292   : > { %v1192_v22 = vpop.permute.xlu1 %1191 }
 0x293   : > { %1257 = vst.msk [vmem:[#allocation3 + $0xf8] sm:$0xff] %vm1225_vm9, %v1192_v22  ;;  %v1321_v50 = vpop.permute.xlu0 %1320 }
 0x294   : > { %1387 = vst.msk [vmem:[#allocation3 + $0xf0] sm:$0xff] %vm1356_vm10, %v1321_v50 }
 0x296   : > { %v1319_v26 = vpop.permute.xlu1 %1318 }
 0x297   : > { %1386 = vst.msk [vmem:[#allocation3 + $0xe8] sm:$0xff] %vm1356_vm10, %v1319_v26  ;;  %v1452_v24 = vpop.permute.xlu0 %1451 }
 0x298   : > { %v2321_v8 = vpop.f32.mrb[8].mxu0  ;;  %1520 = vst.msk [vmem:[#allocation3 + $0xe0] sm:$0xff] %vm1491_vm11, %v1452_v24 }
 0x299   : > { %1951 = vst.msk [vmem:[%s3832_s29 + $0x50] sm:$0xff] %vm1940_vm14, %v2321_v8  ;;  %v1845_v16 = vpop.f32.mrb[9].mxu0  ;;  %v2054_v57 = vmul.f32 %v2321_v8, %v2321_v8  ;;  %v1992_v19 = vsel %vm1940_vm14, %v2321_v8, 0.0 }
 0x29a   : > { %1949 = vst.msk [vmem:[%s3832_s29 + $0x40] sm:$0xff] %vm1940_vm14, %v1845_v16  ;;  %v1988_v30 = vsel %vm1940_vm14, %v1845_v16, 0.0  ;;  %v2052_v3 = vmul.f32 %v1845_v16, %v1845_v16  ;;  %v1323_v31 = vpop.permute.xlu1 %1322  ;;  %v2322_v2 = vpop.f32.mrb[10].mxu0 }
 0x29b   : > { %v1989_v32 = vadd.f32 %v1988_v30, %v1987_v14  ;;  %1388 = vst.msk [vmem:[#allocation3 + $0xf8] sm:$0xff] %vm1356_vm10, %v1323_v31  ;;  %v1848_v33 = vpop.f32.mrb[11].mxu0  ;;  %v1456_v61 = vpop.permute.xlu0 %1455  ;;  %v2055_v63 = vmul.f32 %v2322_v2, %v2322_v2  ;;  %v2095_v35 = vsel %vm1940_vm14, %v2054_v57, 0.0  ;;  %v1994_v58 = vsel %vm1940_vm14, %v2322_v2, 0.0 }
 0x29c   : > { %1952 = vst.msk [vmem:[%s3832_s29 + $0x58] sm:$0xff] %vm1940_vm14, %v2322_v2  ;;  %v2091_v0 = vsel %vm1940_vm14, %v2052_v3, 0.0  ;;  %1950 = vst.msk [vmem:[%s3832_s29 + $0x48] sm:$0xff] %vm1940_vm14, %v1848_v33  ;;  %v1990_v48 = vsel %vm1940_vm14, %v1848_v33, 0.0  ;;  %v2053_v13 = vmul.f32 %v1848_v33, %v1848_v33 }
 0x29d   : > { %v2092_v23 = vadd.f32 %v2091_v0, %v3895_v49  ;;  %v1991_v1 = vadd.f32 %v1990_v48, %v1989_v32  ;;  %1522 = vst.msk [vmem:[#allocation3 + $0xf0] sm:$0xff] %vm1491_vm11, %v1456_v61  ;;  %v2097_v34 = vsel %vm1940_vm14, %v2055_v63, 0.0 }
 0x29e   : > { %v2093_v38 = vsel %vm1940_vm14, %v2053_v13, 0.0  ;;  %v1454_v15 = vpop.permute.xlu1 %1453 }
 0x29f   : > { %v1993_v59 = vadd.f32 %v1992_v19, %v1991_v1  ;;  %v2094_v56 = vadd.f32 %v2093_v38, %v2092_v23  ;;  %1521 = vst.msk [vmem:[#allocation3 + $0xe8] sm:$0xff] %vm1491_vm11, %v1454_v15  ;;  %v1586_v27 = vpop.permute.xlu0 %1585 }
 0x2a0   : > { %1654 = vst.msk [vmem:[#allocation3 + $0xe0] sm:$0xff] %vm1625_vm12, %v1586_v27 }
 0x2a1   : > { %v2096_v42 = vadd.f32 %v2095_v35, %v2094_v56  ;;  %v1995_v12 = vadd.f32 %v1994_v58, %v1993_v59 }
 0x2a2   : > { %v1458_v17 = vpop.permute.xlu1 %1457 }
 0x2a3   : > { %1523 = vst.msk [vmem:[#allocation3 + $0xf8] sm:$0xff] %vm1491_vm11, %v1458_v17  ;;  %v2098_v43 = vadd.f32 %v2097_v34, %v2096_v42  ;;  %v1590_v28 = vpop.permute.xlu0 %1589 }
 0x2a4   : > { %1656 = vst.msk [vmem:[#allocation3 + $0xf0] sm:$0xff] %vm1625_vm12, %v1590_v28 }
 0x2a6   : > { %v1588_v7 = vpop.permute.xlu1 %1587 }
 0x2a7   : > { %1655 = vst.msk [vmem:[#allocation3 + $0xe8] sm:$0xff] %vm1625_vm12, %v1588_v7  ;;  %v1686_v6 = vld [vmem:[#allocation3 + $0xe0] sm:$0xff] }
 0x2aa   : > { %v1592_v41 = vpop.permute.xlu1 %1591 }
 0x2ab   : > { %1657 = vst.msk [vmem:[#allocation3 + $0xf8] sm:$0xff] %vm1625_vm12, %v1592_v41  ;;  %v1688_v14 = vld [vmem:[#allocation3 + $0xf0] sm:$0xff] }
 0x2ae   : > { %v1687_v4 = vld [vmem:[#allocation3 + $0xe8] sm:$0xff] }
 0x2af   : > { %v1704_v52 = vpack.c.bf16 %v1687_v4, %v1686_v6 }
 0x2b1   : > { %2339 = vmatprep.mubr.msk.bf16.mxu1 %vm1726_vm13, %v1704_v52 }
 0x2b2   : > { %v1689_v51 = vld [vmem:[#allocation3 + $0xf8] sm:$0xff] }
 0x2b3   : > { %v1705_v40 = vpack.c.bf16 %v1689_v51, %v1688_v14 }
 0x2b5   : > { %2340 = vmatmul.mubr.msk.bf16.gmra.mrb[12].mxu1 %vm1726_vm13, %v1705_v40 }
 0x2c8   : > { %v2325_v49 = vpop.f32.mrb[12].mxu0 }
 0x2c9   : > { %1955 = vst.msk [vmem:[%s3832_s29 + $0x70] sm:$0xff] %vm1940_vm14, %v2325_v49  ;;  %v1861_v9 = vpop.f32.mrb[13].mxu0  ;;  %v2058_v60 = vmul.f32 %v2325_v49, %v2325_v49  ;;  %v2000_v54 = vsel %vm1940_vm14, %v2325_v49, 0.0 }
 0x2ca   : > { %1953 = vst.msk [vmem:[%s3832_s29 + $0x60] sm:$0xff] %vm1940_vm14, %v1861_v9  ;;  %v1996_v44 = vsel %vm1940_vm14, %v1861_v9, 0.0  ;;  %v2056_v37 = vmul.f32 %v1861_v9, %v1861_v9  ;;  %v2326_v20 = vpop.f32.mrb[14].mxu0 }
 0x2cb   : > { %v1997_v53 = vadd.f32 %v1996_v44, %v1995_v12  ;;  %1956 = vst.msk [vmem:[%s3832_s29 + $0x78] sm:$0xff] %vm1940_vm14, %v2326_v20  ;;  %v1864_v62 = vpop.f32.mrb[15].mxu0  ;;  %v2059_v18 = vmul.f32 %v2326_v20, %v2326_v20  ;;  %v2103_v21 = vsel %vm1940_vm14, %v2058_v60, 0.0  ;;  %v2002_v29 = vsel %vm1940_vm14, %v2326_v20, 0.0 }
 0x2cc   : > { %v2099_v46 = vsel %vm1940_vm14, %v2056_v37, 0.0  ;;  %1954 = vst.msk [vmem:[%s3832_s29 + $0x68] sm:$0xff] %vm1940_vm14, %v1864_v62  ;;  %v1998_v45 = vsel %vm1940_vm14, %v1864_v62, 0.0  ;;  %v2057_v36 = vmul.f32 %v1864_v62, %v1864_v62 }
 0x2cd   : > { %v2100_v11 = vadd.f32 %v2099_v46, %v2098_v43  ;;  %v1999_v5 = vadd.f32 %v1998_v45, %v1997_v53  ;;  %v2105_v22 = vsel %vm1940_vm14, %v2059_v18, 0.0 }
 0x2ce   : > { %v2101_v55 = vsel %vm1940_vm14, %v2057_v36, 0.0 }
 0x2cf   : > { %v2001_v47 = vadd.f32 %v2000_v54, %v1999_v5  ;;  %v2102_v25 = vadd.f32 %v2101_v55, %v2100_v11 }
 0x2d1   : > { %v2104_v10 = vadd.f32 %v2103_v21, %v2102_v25  ;;  %v2003_v39 = vadd.f32 %v2002_v29, %v2001_v47 }
 0x2d3   : > { %v2106_v50 = vadd.f32 %v2105_v22, %v2104_v10 }
 0x2f8   : > { %v2329_v26 = vpop.f32.mrb[0].mxu1 }
 0x2f9   : > { %1959 = vst.msk [vmem:[%s3832_s29 + $0x90] sm:$0xff] %vm1940_vm14, %v2329_v26  ;;  %v1877_v8 = vpop.f32.mrb[1].mxu1  ;;  %v2062_v2 = vmul.f32 %v2329_v26, %v2329_v26  ;;  %v2008_v13 = vsel %vm1940_vm14, %v2329_v26, 0.0 }
 0x2fa   : > { %1957 = vst.msk [vmem:[%s3832_s29 + $0x80] sm:$0xff] %vm1940_vm14, %v1877_v8  ;;  %v2004_v24 = vsel %vm1940_vm14, %v1877_v8, 0.0  ;;  %v2060_v16 = vmul.f32 %v1877_v8, %v1877_v8  ;;  %v2330_v30 = vpop.f32.mrb[2].mxu1 }
 0x2fb   : > { %v2005_v3 = vadd.f32 %v2004_v24, %v2003_v39  ;;  %1960 = vst.msk [vmem:[%s3832_s29 + $0x98] sm:$0xff] %vm1940_vm14, %v2330_v30  ;;  %v1880_v31 = vpop.f32.mrb[3].mxu1  ;;  %v2063_v61 = vmul.f32 %v2330_v30, %v2330_v30  ;;  %v2111_v63 = vsel %vm1940_vm14, %v2062_v2, 0.0  ;;  %v2010_v38 = vsel %vm1940_vm14, %v2330_v30, 0.0 }
 0x2fc   : > { %v2107_v32 = vsel %vm1940_vm14, %v2060_v16, 0.0  ;;  %1958 = vst.msk [vmem:[%s3832_s29 + $0x88] sm:$0xff] %vm1940_vm14, %v1880_v31  ;;  %v2006_v33 = vsel %vm1940_vm14, %v1880_v31, 0.0  ;;  %v2061_v57 = vmul.f32 %v1880_v31, %v1880_v31 }
 0x2fd   : > { %v2108_v0 = vadd.f32 %v2107_v32, %v2106_v50  ;;  %v2007_v48 = vadd.f32 %v2006_v33, %v2005_v3  ;;  %v2113_v56 = vsel %vm1940_vm14, %v2063_v61, 0.0 }
 0x2fe   : > { %v2109_v23 = vsel %vm1940_vm14, %v2061_v57, 0.0 }
 0x2ff   : > { %v2009_v1 = vadd.f32 %v2008_v13, %v2007_v48  ;;  %v2110_v19 = vadd.f32 %v2109_v23, %v2108_v0 }
 0x301   : > { %v2112_v15 = vadd.f32 %v2111_v63, %v2110_v19  ;;  %v2011_v59 = vadd.f32 %v2010_v38, %v2009_v1 }
 0x303   : > { %v2114_v35 = vadd.f32 %v2113_v56, %v2112_v15 }
 0x328   : > { %v2333_v58 = vpop.f32.mrb[4].mxu1 }
 0x329   : > { %1963 = vst.msk [vmem:[%s3832_s29 + $0xb0] sm:$0xff] %vm1940_vm14, %v2333_v58  ;;  %v1893_v27 = vpop.f32.mrb[5].mxu1  ;;  %v2066_v28 = vmul.f32 %v2333_v58, %v2333_v58  ;;  %v2016_v14 = vsel %vm1940_vm14, %v2333_v58, 0.0 }
 0x32a   : > { %1961 = vst.msk [vmem:[%s3832_s29 + $0xa0] sm:$0xff] %vm1940_vm14, %v1893_v27  ;;  %v2012_v42 = vsel %vm1940_vm14, %v1893_v27, 0.0  ;;  %v2064_v12 = vmul.f32 %v1893_v27, %v1893_v27  ;;  %v2334_v34 = vpop.f32.mrb[6].mxu1 }
 0x32b   : > { %v2013_v17 = vadd.f32 %v2012_v42, %v2011_v59  ;;  %1964 = vst.msk [vmem:[%s3832_s29 + $0xb8] sm:$0xff] %vm1940_vm14, %v2334_v34  ;;  %v1896_v43 = vpop.f32.mrb[7].mxu1  ;;  %v2067_v51 = vmul.f32 %v2334_v34, %v2334_v34  ;;  %v2119_v44 = vsel %vm1940_vm14, %v2066_v28, 0.0  ;;  %v2018_v37 = vsel %vm1940_vm14, %v2334_v34, 0.0 }
 0x32c   : > { %v2115_v7 = vsel %vm1940_vm14, %v2064_v12, 0.0  ;;  %1962 = vst.msk [vmem:[%s3832_s29 + $0xa8] sm:$0xff] %vm1940_vm14, %v1896_v43  ;;  %v2014_v41 = vsel %vm1940_vm14, %v1896_v43, 0.0  ;;  %v2065_v6 = vmul.f32 %v1896_v43, %v1896_v43 }
 0x32d   : > { %v2116_v4 = vadd.f32 %v2115_v7, %v2114_v35  ;;  %v2015_v52 = vadd.f32 %v2014_v41, %v2013_v17  ;;  %v2121_v62 = vsel %vm1940_vm14, %v2067_v51, 0.0 }
 0x32e   : > { %v2117_v40 = vsel %vm1940_vm14, %v2065_v6, 0.0 }
 0x32f   : > { %v2017_v49 = vadd.f32 %v2016_v14, %v2015_v52  ;;  %v2118_v9 = vadd.f32 %v2117_v40, %v2116_v4 }
 0x331   : > { %v2120_v20 = vadd.f32 %v2119_v44, %v2118_v9  ;;  %v2019_v53 = vadd.f32 %v2018_v37, %v2017_v49 }
 0x333   : > { %v2122_v60 = vadd.f32 %v2121_v62, %v2120_v20 }
 0x358   : > { %v2337_v46 = vpop.f32.mrb[8].mxu1 }
 0x359   : > { %1967 = vst.msk [vmem:[%s3832_s29 + $0xd0] sm:$0xff] %vm1940_vm14, %v2337_v46  ;;  %v1909_v45 = vpop.f32.mrb[9].mxu1  ;;  %v2070_v55 = vmul.f32 %v2337_v46, %v2337_v46  ;;  %v2024_v39 = vsel %vm1940_vm14, %v2337_v46, 0.0 }
 0x35a   : > { %1965 = vst.msk [vmem:[%s3832_s29 + $0xc0] sm:$0xff] %vm1940_vm14, %v1909_v45  ;;  %v2020_v36 = vsel %vm1940_vm14, %v1909_v45, 0.0  ;;  %v2068_v11 = vmul.f32 %v1909_v45, %v1909_v45  ;;  %v2338_v5 = vpop.f32.mrb[10].mxu1 }
 0x35b   : > { %v2021_v54 = vadd.f32 %v2020_v36, %v2019_v53  ;;  %1968 = vst.msk [vmem:[%s3832_s29 + $0xd8] sm:$0xff] %vm1940_vm14, %v2338_v5  ;;  %v1912_v18 = vpop.f32.mrb[11].mxu1  ;;  %v2071_v22 = vmul.f32 %v2338_v5, %v2338_v5  ;;  %v2127_v24 = vsel %vm1940_vm14, %v2070_v55, 0.0  ;;  %v2026_v16 = vsel %vm1940_vm14, %v2338_v5, 0.0 }
 0x35c   : > { %v2123_v47 = vsel %vm1940_vm14, %v2068_v11, 0.0  ;;  %1966 = vst.msk [vmem:[%s3832_s29 + $0xc8] sm:$0xff] %vm1940_vm14, %v1912_v18  ;;  %v2022_v25 = vsel %vm1940_vm14, %v1912_v18, 0.0  ;;  %v2069_v21 = vmul.f32 %v1912_v18, %v1912_v18 }
 0x35d   : > { %v2124_v29 = vadd.f32 %v2123_v47, %v2122_v60  ;;  %v2023_v10 = vadd.f32 %v2022_v25, %v2021_v54  ;;  %v2129_v31 = vsel %vm1940_vm14, %v2071_v22, 0.0 }
 0x35e   : > { %v2125_v50 = vsel %vm1940_vm14, %v2069_v21, 0.0 }
 0x35f   : > { %v2025_v26 = vadd.f32 %v2024_v39, %v2023_v10  ;;  %v2126_v8 = vadd.f32 %v2125_v50, %v2124_v29 }
 0x361   : > { %v2128_v30 = vadd.f32 %v2127_v24, %v2126_v8  ;;  %v2027_v3 = vadd.f32 %v2026_v16, %v2025_v26 }
 0x363   : > { %v2130_v2 = vadd.f32 %v2129_v31, %v2128_v30 }
 0x388   : > { %v2341_v32 = vpop.f32.mrb[12].mxu1 }
 0x389   : > { %1971 = vst.msk [vmem:[%s3832_s29 + $0xf0] sm:$0xff] %vm1940_vm14, %v2341_v32  ;;  %v1925_v33 = vpop.f32.mrb[13].mxu1  ;;  %v2074_v23 = vmul.f32 %v2341_v32, %v2341_v32  ;;  %v2032_v59 = vsel %vm1940_vm14, %v2341_v32, 0.0 }
 0x38a   : > { %1969 = vst.msk [vmem:[%s3832_s29 + $0xe0] sm:$0xff] %vm1940_vm14, %v1925_v33  ;;  %v2028_v57 = vsel %vm1940_vm14, %v1925_v33, 0.0  ;;  %v2072_v0 = vmul.f32 %v1925_v33, %v1925_v33  ;;  %v2342_v48 = vpop.f32.mrb[14].mxu1 }
 0x38b   : > { %v2029_v13 = vadd.f32 %v2028_v57, %v2027_v3  ;;  %1972 = vst.msk [vmem:[%s3832_s29 + $0xf8] sm:$0xff] %vm1940_vm14, %v2342_v48  ;;  %v1928_v61 = vpop.f32.mrb[15].mxu1  ;;  %v2075_v56 = vmul.f32 %v2342_v48, %v2342_v48  ;;  %v2135_v42 = vsel %vm1940_vm14, %v2074_v23, 0.0  ;;  %v2034_v12 = vsel %vm1940_vm14, %v2342_v48, 0.0 }
 0x38c   : > { %v2131_v1 = vsel %vm1940_vm14, %v2072_v0, 0.0  ;;  %1970 = vst.msk [vmem:[%s3832_s29 + $0xe8] sm:$0xff] %vm1940_vm14, %v1928_v61  ;;  %v2030_v19 = vsel %vm1940_vm14, %v1928_v61, 0.0  ;;  %v2073_v63 = vmul.f32 %v1928_v61, %v1928_v61 }
 0x38d   : > { %v2132_v38 = vadd.f32 %v2131_v1, %v2130_v2  ;;  %v2031_v15 = vadd.f32 %v2030_v19, %v2029_v13  ;;  %v2137_v43 = vsel %vm1940_vm14, %v2075_v56, 0.0 }
 0x38e   : > { %v2133_v35 = vsel %vm1940_vm14, %v2073_v63, 0.0 }
 0x38f   : > { %v2033_v58 = vadd.f32 %v2032_v59, %v2031_v15  ;;  %v2134_v27 = vadd.f32 %v2133_v35, %v2132_v38 }
 0x391   : > { %v2035_v34 = vadd.f32 %v2034_v12, %v2033_v58  ;;  %v2136_v17 = vadd.f32 %v2135_v42, %v2134_v27 }
 0x393   : > { %v2036_v28 = vrot.slane %v2035_v34, 4  ;;  %v2138_v7 = vadd.f32 %v2137_v43, %v2136_v17 }
 0x395   : > { %v2037_v41 = vadd.f32 %v2036_v28, %v2035_v34  ;;  %v2139_v6 = vrot.slane %v2138_v7, 4 }
 0x397   : > { %v2038_v4 = vrot.slane %v2037_v41, 2  ;;  %v2140_v52 = vadd.f32 %v2139_v6, %v2138_v7 }
 0x399   : > { %v2039_v14 = vadd.f32 %v2038_v4, %v2037_v41  ;;  %v2141_v51 = vrot.slane %v2140_v52, 2 }
 0x39b   : > { %v2040_v40 = vrot.slane %v2039_v14, 1  ;;  %v2142_v49 = vadd.f32 %v2141_v51, %v2140_v52 }
 0x39d   : > { %v2041_v9 = vadd.f32 %v2040_v40, %v2039_v14  ;;  %v2143_v44 = vrot.slane %v2142_v49, 1 }
 0x39f   : > { %2043 = vst.msk [vmem:[%s171_s4] sm:$0x1] %vm2042_vm15, %v2041_v9  ;;  %v2144_v37 = vadd.f32 %v2143_v44, %v2142_v49 }
 0x3a1   : > { %2145 = vst.msk [vmem:[%s171_s4 + $0x1] sm:$0x1] %vm2042_vm15, %v2144_v37 }
 0x3a2   : > { %2415 = shalt.err (!%p2412_p3)
}
 0x3a3   : > { %s2416_s19 = scalar_lea.hbm %s4030_s8, 32  ;;  %s2420_s27 = scalar_lea.hbm %s4075_s3, 64 }
 0x3a4   : > { %p2417_p4 = scmp.ne.s32.totalorder %s4030_s8, %s2416_s19  ;;  %p2421_p9 = scmp.lt.u32.totalorder %s4030_s8, %s4075_s3 }
 0x3a5   : > { %p2422_p10 = scmp.lt.u32.totalorder %s2420_s27, %s2416_s19  ;;  %p2424_p12 = scmp.lt.u32.totalorder %s2416_s19, %s4030_s8 }
 0x3a6   : > { %p2418_p7 = pnand %p2417_p4, %p2534_p5 }
 0x3a7   : > { %p2423_p11 = por %p2422_p10, %p2421_p9 }
 0x3a8   : > { %p2419_p8 = pneg %p2418_p7 }
 0x3a9   : > { %p2425_p13 = por %p2424_p12, %p2423_p11 }
 0x3ab   : > { %p2426_p0 = pnand %p2425_p13, %p2419_p8 }
 0x3ad   : > { %2429 = shalt.err (!%p2426_p0)
}
 0x3ae   : > { %2351 = dma.vmem_to_hbm [thread:$0]  (%p2534_p5), %s4032_s5, 32, %s4030_s8, %s2152_s9  }
 0x3af PF: > { %p2357_p1 = scmp.ge.s32.totalorder %s2464_s15, 2  ;;  %s2188_s24 = sand.u32 1, %s2452_s12  }
 0x3b0   : > { %s2189_s25 = scalar_lea.sflag [#allocation5], %s2188_s24 }
 0x3b1   : > { %p2354_p2 = pnand %p2357_p1, %p2538_p6 }
 0x3b3   : > { %2447 = dma.done.wait (!%p2354_p2), %s2189_s25, 32  }
 0x3b4   : > { %2449 = vsyncadd (!%p2354_p2), %s2189_s25, 4294967264  ;;  %p14_p3 = scmp.ge.s32.totalorder %s2521_s18, 4   ;;  %s4218_s12 = smov %s2456_s13 }
 0x3b5   : > { %s4219_s13 = smov %s2460_s14  ;;  %s4220_s14 = smov %s2532_s21 }
 0x3b6   : > { %s4221_s15 = smov %s2521_s18  ;;  %16 = sbr.rel (!%p14_p3) target bundleno = 3 (0x3), region = 76 }
 0x3bd   :  { %2194 = vsyncpa [#allocation5], 1 }
 0x3be   :  { %2196 = vsyncpa [#allocation5 + $0x1], 1 }

</bundles_post_ra>
